<compile_context>
chip_gen: v5e
topology: v5e:2x2
jax: 0.10.0
libtpu: 0.0.40
codegen_flags: <defaults>
</compile_context>

<pallas_src>
import jax
import jax.numpy as jnp
from jax import lax
from jax.experimental import pallas as pl
from jax.experimental.pallas import tpu as pltpu

# ---- small, TPU-friendly problem sizes -------------------------------------------------
B = 2            # batch (objects)
N = 256          # points per cloud
C = 3            # xyz
H = 128          # point-cloud feature dim (lane-aligned)
G = 8            # grasps generated per object
D = 7            # grasp pose dim (3 trans + 4 quat)
T_STEPS = 8      # diffusion denoising steps
PTS_W = 8        # points zero-padded to 8 lanes (K=8 MXU contraction)
LAT_W = 128      # latent lane width (lanes 0..D-1 meaningful)
OUT_W = 128      # output slab width: lanes [0:D]=pose, lane D=confidence, rest zero
NUM_MATS = 9     # packed [128,128] matrices
NUM_VECS = 10    # packed [1,128] bias / row vectors


# ======================= fused Pallas kernel ==============================================

def _graspgen_fused_kernel(pts_ref, lat_ref, w1_ref, wmat_ref, bvec_ref, out_ref):
    """Entire GraspGen forward for one batch item (one program per batch element).

    fused pointnet (gen|dis) -> 8-step diffusion denoise -> quat-normalize ->
    per-grasp scoring MLP -> sigmoid.  Lane-dense [G, 128] output slab.
    """
    x = pts_ref[0]                                                     # [N, 8] f32 (xyz + 0-pad)

    # ---- fused generator|discriminator point encoder, first layer = one K=8 MXU matmul ----
    h0 = jnp.dot(x, w1_ref[...], preferred_element_type=jnp.float32)   # [N, 2H]
    hg = jnp.maximum(h0[:, :H] + bvec_ref[0:1, :], 0.0)                # gen half   [N, H]
    hd = jnp.maximum(h0[:, H:] + bvec_ref[1:2, :], 0.0)                # dis half   [N, H]
    hg = jnp.maximum(
        jnp.dot(hg.astype(jnp.bfloat16), wmat_ref[0],
                preferred_element_type=jnp.float32) + bvec_ref[2:3, :], 0.0)
    hd = jnp.maximum(
        jnp.dot(hd.astype(jnp.bfloat16), wmat_ref[1],
                preferred_element_type=jnp.float32) + bvec_ref[3:4, :], 0.0)
    feat_g = jnp.max(hg, axis=0, keepdims=True)                        # [1, H] (max-pool)
    feat_d = jnp.max(hd, axis=0, keepdims=True)                        # [1, H]

    # ---------------- generator: iterative denoising (lane-dense [G, 128] latent) ----------
    w1f = wmat_ref[2]                                                  # [H, H]  bf16
    w1x = wmat_ref[3]                                                  # [H, H]  bf16 (rows >= D are 0)
    w2d = wmat_ref[4]                                                  # [H, H]  bf16 (cols >= D are 0)
    b1 = bvec_ref[4:5, :]                                              # [1, H]
    w1t = bvec_ref[5:6, :]                                             # [1, H]
    b2 = bvec_ref[6:7, :]                                              # [1, H] (lanes >= D are 0)
    # loop-invariant conditioning term hoisted out of the diffusion step
    fbias = jnp.dot(feat_g.astype(jnp.bfloat16), w1f,
                    preferred_element_type=jnp.float32) + b1           # [1, H]
    inv_t = 1.0 / T_STEPS

    def step(i, lat):                                                  # lat: [G, LAT_W] f32
        t = (T_STEPS - i).astype(jnp.float32) * inv_t                  # scalar time
        h = jnp.dot(lat.astype(jnp.bfloat16), w1x,
                    preferred_element_type=jnp.float32)                # [G, H]
        h = jnp.maximum(h + fbias + t * w1t, 0.0)
        eps = jnp.dot(h.astype(jnp.bfloat16), w2d,
                      preferred_element_type=jnp.float32) + b2         # [G, H] (lanes >= D stay 0)
        return lat - inv_t * eps

    lat = lax.fori_loop(0, T_STEPS, step, lat_ref[0], unroll=True)     # [G, LAT_W]

    # ---- quaternion-normalization epilogue (lane-mask instead of sub-lane slices) ----------
    lane = lax.broadcasted_iota(jnp.int32, (G, OUT_W), 1)
    quat_mask = (lane >= 3) & (lane < D)
    qsq = jnp.sum(jnp.where(quat_mask, lat * lat, 0.0), axis=-1, keepdims=True)   # [G, 1]
    inv_n = lax.rsqrt(qsq + 1e-8)
    pose = lat * jnp.where(quat_mask, inv_n, 1.0)                      # [G, OUT_W]; lanes >= D are 0

    # ---------------- discriminator: per-grasp scoring MLP ----------------------------------
    fproj = jnp.dot(feat_d.astype(jnp.bfloat16), wmat_ref[5],
                    preferred_element_type=jnp.float32)                # [1, H]
    h1 = jnp.maximum(
        jnp.dot(pose.astype(jnp.bfloat16), wmat_ref[6],
                preferred_element_type=jnp.float32) + fproj + bvec_ref[7:8, :], 0.0)
    h2 = jnp.maximum(
        jnp.dot(h1.astype(jnp.bfloat16), wmat_ref[7],
                preferred_element_type=jnp.float32) + bvec_ref[8:9, :], 0.0)
    logits = jnp.dot(h2.astype(jnp.bfloat16), wmat_ref[8],
                     preferred_element_type=jnp.float32) + bvec_ref[9:10, :]       # [G, OUT_W]
    conf = 0.5 * (jnp.tanh(0.5 * logits) + 1.0)                        # sigmoid (tanh -> EUP)

    # single unmasked, lane-dense [G, 128] store: lanes 0..D-1 = pose, lane D = confidence
    out_ref[0] = jnp.where(lane == D, conf, pose)


def graspgen_forward_slab(points8, latents, enc_w1, wmat, bvec):
    """points8 [B,N,8] f32, latents [B,G,128] f32, packed weights -> slab [B,G,128] f32."""
    flops = 2 * B * (N * PTS_W * 2 * H          # fused first layer
                     + 2 * N * H * H            # two second-layer encoder matmuls
                     + H * H                    # fbias projection
                     + T_STEPS * 2 * G * H * H  # diffusion loop
                     + H * H + 3 * G * H * H)   # scorer
    bytes_accessed = (points8.size * 4 + latents.size * 4 + enc_w1.size * 4
                      + wmat.size * 2 + bvec.size * 4 + B * G * OUT_W * 4)
    return pl.pallas_call(
        _graspgen_fused_kernel,
        out_shape=jax.ShapeDtypeStruct((B, G, OUT_W), jnp.float32),
        grid=(B,),
        in_specs=[
            pl.BlockSpec((1, N, PTS_W), lambda b: (b, 0, 0)),
            pl.BlockSpec((1, G, LAT_W), lambda b: (b, 0, 0)),
            pl.BlockSpec((PTS_W, 2 * H), lambda b: (0, 0)),
            pl.BlockSpec((NUM_MATS, H, H), lambda b: (0, 0, 0)),
            pl.BlockSpec((NUM_VECS, H), lambda b: (0, 0)),
        ],
        out_specs=pl.BlockSpec((1, G, OUT_W), lambda b: (b, 0, 0)),
        compiler_params=pltpu.CompilerParams(dimension_semantics=("parallel",)),
        cost_estimate=pl.CostEstimate(flops=flops,
                                      transcendentals=B * G * (OUT_W + 1),
                                      bytes_accessed=bytes_accessed),
    )(points8, latents, enc_w1, wmat, bvec)


# ======================= deterministic parameter init + packing ==========================

def init_params(key):
    keys = jax.random.split(key, 12)

    def w(k, shape, fan_in):
        return jax.random.normal(k, shape, jnp.float32) / jnp.sqrt(float(fan_in))

    return {
        # generator point-cloud encoder
        "gen_pn_w1": w(keys[0], (C, H), C), "gen_pn_b1": jnp.zeros((1, H), jnp.float32),
        "gen_pn_w2": w(keys[1], (H, H), H), "gen_pn_b2": jnp.zeros((1, H), jnp.float32),
        # diffusion denoiser
        "den_w1x": w(keys[2], (D, H), D),
        "den_w1f": w(keys[3], (H, H), H),
        "den_w1t": w(keys[4], (1, H), 1),
        "den_b1": jnp.zeros((1, H), jnp.float32),
        "den_w2": w(keys[5], (H, D), H),
        "den_b2": jnp.zeros((1, D), jnp.float32),
        # discriminator point-cloud encoder
        "dis_pn_w1": w(keys[6], (C, H), C), "dis_pn_b1": jnp.zeros((1, H), jnp.float32),
        "dis_pn_w2": w(keys[7], (H, H), H), "dis_pn_b2": jnp.zeros((1, H), jnp.float32),
        # discriminator scorer
        "sc_w1g": w(keys[8], (D, H), D),
        "sc_w1f": w(keys[9], (H, H), H),
        "sc_b1": jnp.zeros((1, H), jnp.float32),
        "sc_w2": w(keys[10], (H, H), H),
        "sc_b2": jnp.zeros((1, H), jnp.float32),
        "sc_w3": w(keys[11], (H, 1), H),
        "sc_b3": jnp.zeros((1, 1), jnp.float32),
    }


def pack_params(p):
    """Pack 21 weight tensors into 3 lane-padded slabs (done once; matrices pre-cast to bf16)."""
    enc_w1 = jnp.zeros((PTS_W, 2 * H), jnp.float32)
    enc_w1 = enc_w1.at[:C, :H].set(p["gen_pn_w1"]).at[:C, H:].set(p["dis_pn_w1"])

    wmat = jnp.zeros((NUM_MATS, H, H), jnp.float32)
    wmat = wmat.at[0].set(p["gen_pn_w2"])
    wmat = wmat.at[1].set(p["dis_pn_w2"])
    wmat = wmat.at[2].set(p["den_w1f"])
    wmat = wmat.at[3, :D, :].set(p["den_w1x"])          # zero rows >= D
    wmat = wmat.at[4, :, :D].set(p["den_w2"])           # zero cols >= D
    wmat = wmat.at[5].set(p["sc_w1f"])
    wmat = wmat.at[6, :D, :].set(p["sc_w1g"])           # zero rows >= D
    wmat = wmat.at[7].set(p["sc_w2"])
    wmat = wmat.at[8, :, D].set(p["sc_w3"][:, 0])       # logit lands in lane D

    bvec = jnp.zeros((NUM_VECS, H), jnp.float32)
    bvec = bvec.at[0].set(p["gen_pn_b1"][0])
    bvec = bvec.at[1].set(p["dis_pn_b1"][0])
    bvec = bvec.at[2].set(p["gen_pn_b2"][0])
    bvec = bvec.at[3].set(p["dis_pn_b2"][0])
    bvec = bvec.at[4].set(p["den_b1"][0])
    bvec = bvec.at[5].set(p["den_w1t"][0])
    bvec = bvec.at[6, :D].set(p["den_b2"][0])
    bvec = bvec.at[7].set(p["sc_b1"][0])
    bvec = bvec.at[8].set(p["sc_b2"][0])
    bvec = bvec.at[9, D].set(p["sc_b3"][0, 0])

    return enc_w1, wmat.astype(jnp.bfloat16), bvec


# ======================= GraspGen pipeline (mirrors PyTorch GraspGen.forward) =============

@jax.jit
def _forward_impl(packed, points, latents):
    enc_w1, wmat, bvec = packed
    # lane-pad inputs (points to K=8, latent to 128 lanes) once in the wrapper
    pts8 = jnp.zeros((B, N, PTS_W), jnp.float32).at[..., :C].set(points)
    lat0 = jnp.zeros((B, G, LAT_W), jnp.float32).at[..., :D].set(latents)
    slab = graspgen_forward_slab(pts8, lat0, enc_w1, wmat, bvec)       # [B, G, 128]
    grasps_pred = slab[..., :D]                                        # [B, G, D]
    confidence = slab[..., D]                                          # [B, G]
    trans, quat = grasps_pred[..., :3], grasps_pred[..., 3:]
    stats = {
        "grasp_trans_norm_mean": jnp.mean(jnp.linalg.norm(trans, axis=-1)),
        "grasp_quat_norm_mean": jnp.mean(jnp.linalg.norm(quat, axis=-1)),
    }
    return grasps_pred, confidence, stats


class GraspGenPallas:
    """JAX/Pallas re-implementation of GraspGen: generator.infer -> discriminator.infer,
    fused into a single Pallas kernel."""
    # TODO(synk): GraspGenGenerator / GraspGenDiscriminator internals (and config/checkpoint
    # loading) are not in the source; a representative PointNet + diffusion + scoring-MLP
    # pipeline with deterministic weights is used in their place.

    def __init__(self, params):
        self.params = params
        self.packed = pack_params(params)   # padded / bf16-cast once, reused every call

    def forward(self, data, noise_key=None):
        if noise_key is None:
            noise_key = jax.random.PRNGKey(42)   # deterministic diffusion noise init
        points = data["points"]                  # [B, N, C]
        latents = jax.random.normal(noise_key, (B, G, D), jnp.float32)
        grasps_pred, confidence, stats = _forward_impl(self.packed, points, latents)
        data["grasps_pred"] = grasps_pred
        data["grasp_key"] = "grasps_pred"
        outputs = {"grasps_pred": grasps_pred, "grasp_confidence": confidence}
        return outputs, {}, stats

    def infer(self, data, return_metrics=False):
        return self.forward(data)


# ======================= demo =============================================================

if __name__ == "__main__":
    key = jax.random.PRNGKey(0)
    points = jax.random.normal(key, (B, N, C), jnp.float32)    # [2, 256, 3]
    data = {"points": points}

    model = GraspGenPallas(init_params(jax.random.PRNGKey(1)))
    outputs, losses, stats = model.forward(data)

    jax.block_until_ready(outputs["grasps_pred"])
    jax.block_until_ready(outputs["grasp_confidence"])
    jax.block_until_ready(stats["grasp_trans_norm_mean"])

    assert outputs["grasps_pred"].shape == (B, G, D)
    assert outputs["grasp_confidence"].shape == (B, G)
    assert bool(jnp.all(jnp.isfinite(outputs["grasps_pred"])))
    assert bool(jnp.all((outputs["grasp_confidence"] >= 0.0)
                        & (outputs["grasp_confidence"] <= 1.0)))
    print("KERNEL_OK")
</pallas_src>

<mosaic_0001>
module attributes {stable_mosaic.version = 11 : i64} {
  func.func @_graspgen_fused_kernel(%arg0: i32, %arg1: memref<1x256x8xf32, #tpu.memory_space<vmem>>, %arg2: memref<1x8x128xf32, #tpu.memory_space<vmem>>, %arg3: memref<8x256xf32, #tpu.memory_space<vmem>>, %arg4: memref<9x128x128xbf16, #tpu.memory_space<vmem>>, %arg5: memref<10x128xf32, #tpu.memory_space<vmem>>, %arg6: memref<1x8x128xf32, #tpu.memory_space<vmem>>) attributes {dimension_semantics = [#tpu.dimension_semantics<parallel>], iteration_bounds = array<i64: 2>, scalar_prefetch = 0 : i64, scratch_operands = 0 : i64, tpu.core_type = #tpu.core_type<tc>, window_params = [{transform_indices = @transform_0, window_bounds = array<i64: 1, 256, 8>}, {transform_indices = @transform_1, window_bounds = array<i64: 1, 8, 128>}, {pipeline_mode = #tpu.pipeline_mode<synchronous>, transform_indices = @transform_2, window_bounds = array<i64: 8, 256>}, {pipeline_mode = #tpu.pipeline_mode<synchronous>, transform_indices = @transform_3, window_bounds = array<i64: 9, 128, 128>}, {pipeline_mode = #tpu.pipeline_mode<synchronous>, transform_indices = @transform_4, window_bounds = array<i64: 10, 128>}, {transform_indices = @transform_5, window_bounds = array<i64: 1, 8, 128>}]} {
    %c0 = arith.constant 0 : index
    %c0_0 = arith.constant 0 : index
    %c0_1 = arith.constant 0 : index
    %0 = vector.load %arg1[%c0, %c0_0, %c0_1] : memref<1x256x8xf32, #tpu.memory_space<vmem>>, vector<1x256x8xf32>
    %1 = vector.shape_cast %0 : vector<1x256x8xf32> to vector<256x8xf32>
    %c0_2 = arith.constant 0 : index
    %c0_3 = arith.constant 0 : index
    %2 = vector.load %arg3[%c0_2, %c0_3] : memref<8x256xf32, #tpu.memory_space<vmem>>, vector<8x256xf32>
    %cst = arith.constant dense<0.000000e+00> : vector<256x256xf32>
    %3 = tpu.matmul %1, %2, %cst {dimension_numbers = #tpu.dot_dimension_numbers<[1], [0], [0], [1], [0, 0, 1, 1], [], []>} : vector<256x8xf32>, vector<8x256xf32>, vector<256x256xf32> -> vector<256x256xf32>
    %4 = vector.extract_strided_slice %3 {offsets = [0, 0], sizes = [256, 128], strides = [1, 1]} : vector<256x256xf32> to vector<256x128xf32>
    %c0_4 = arith.constant 0 : index
    %c0_5 = arith.constant 0 : index
    %5 = vector.load %arg5[%c0_4, %c0_5] : memref<10x128xf32, #tpu.memory_space<vmem>>, vector<1x128xf32>
    %6 = vector.broadcast %5 : vector<1x128xf32> to vector<256x128xf32>
    %7 = arith.addf %4, %6 : vector<256x128xf32>
    %cst_6 = arith.constant 0.000000e+00 : f32
    %8 = vector.broadcast %cst_6 : f32 to vector<256x128xf32>
    %9 = arith.maximumf %7, %8 : vector<256x128xf32>
    %10 = vector.extract_strided_slice %3 {offsets = [0, 128], sizes = [256, 128], strides = [1, 1]} : vector<256x256xf32> to vector<256x128xf32>
    %c1 = arith.constant 1 : index
    %c0_7 = arith.constant 0 : index
    %11 = vector.load %arg5[%c1, %c0_7] : memref<10x128xf32, #tpu.memory_space<vmem>>, vector<1x128xf32>
    %12 = vector.broadcast %11 : vector<1x128xf32> to vector<256x128xf32>
    %13 = arith.addf %10, %12 : vector<256x128xf32>
    %cst_8 = arith.constant 0.000000e+00 : f32
    %14 = vector.broadcast %cst_8 : f32 to vector<256x128xf32>
    %15 = arith.maximumf %13, %14 : vector<256x128xf32>
    %16 = arith.truncf %9 : vector<256x128xf32> to vector<256x128xbf16>
    %c0_9 = arith.constant 0 : index
    %c0_10 = arith.constant 0 : index
    %c0_11 = arith.constant 0 : index
    %17 = vector.load %arg4[%c0_9, %c0_10, %c0_11] : memref<9x128x128xbf16, #tpu.memory_space<vmem>>, vector<1x128x128xbf16>
    %18 = vector.shape_cast %17 : vector<1x128x128xbf16> to vector<128x128xbf16>
    %cst_12 = arith.constant dense<0.000000e+00> : vector<256x128xf32>
    %19 = tpu.matmul %16, %18, %cst_12 {dimension_numbers = #tpu.dot_dimension_numbers<[1], [0], [0], [1], [0, 0, 1, 1], [], []>} : vector<256x128xbf16>, vector<128x128xbf16>, vector<256x128xf32> -> vector<256x128xf32>
    %c2 = arith.constant 2 : index
    %c0_13 = arith.constant 0 : index
    %20 = vector.load %arg5[%c2, %c0_13] : memref<10x128xf32, #tpu.memory_space<vmem>>, vector<1x128xf32>
    %21 = vector.broadcast %20 : vector<1x128xf32> to vector<256x128xf32>
    %22 = arith.addf %19, %21 : vector<256x128xf32>
    %cst_14 = arith.constant 0.000000e+00 : f32
    %23 = vector.broadcast %cst_14 : f32 to vector<256x128xf32>
    %24 = arith.maximumf %22, %23 : vector<256x128xf32>
    %25 = arith.truncf %15 : vector<256x128xf32> to vector<256x128xbf16>
    %c1_15 = arith.constant 1 : index
    %c0_16 = arith.constant 0 : index
    %c0_17 = arith.constant 0 : index
    %26 = vector.load %arg4[%c1_15, %c0_16, %c0_17] : memref<9x128x128xbf16, #tpu.memory_space<vmem>>, vector<1x128x128xbf16>
    %27 = vector.shape_cast %26 : vector<1x128x128xbf16> to vector<128x128xbf16>
    %cst_18 = arith.constant dense<0.000000e+00> : vector<256x128xf32>
    %28 = tpu.matmul %25, %27, %cst_18 {dimension_numbers = #tpu.dot_dimension_numbers<[1], [0], [0], [1], [0, 0, 1, 1], [], []>} : vector<256x128xbf16>, vector<128x128xbf16>, vector<256x128xf32> -> vector<256x128xf32>
    %c3 = arith.constant 3 : index
    %c0_19 = arith.constant 0 : index
    %29 = vector.load %arg5[%c3, %c0_19] : memref<10x128xf32, #tpu.memory_space<vmem>>, vector<1x128xf32>
    %30 = vector.broadcast %29 : vector<1x128xf32> to vector<256x128xf32>
    %31 = arith.addf %28, %30 : vector<256x128xf32>
    %cst_20 = arith.constant 0.000000e+00 : f32
    %32 = vector.broadcast %cst_20 : f32 to vector<256x128xf32>
    %33 = arith.maximumf %31, %32 : vector<256x128xf32>
    %cst_21 = arith.constant dense<0xFF800000> : vector<128xf32>
    %34 = vector.multi_reduction <maximumf>, %24, %cst_21 [0] : vector<256x128xf32> to vector<128xf32>
    %35 = vector.shape_cast %34 : vector<128xf32> to vector<1x128xf32>
    %cst_22 = arith.constant dense<0xFF800000> : vector<128xf32>
    %36 = vector.multi_reduction <maximumf>, %33, %cst_22 [0] : vector<256x128xf32> to vector<128xf32>
    %37 = vector.shape_cast %36 : vector<128xf32> to vector<1x128xf32>
    %c2_23 = arith.constant 2 : index
    %c0_24 = arith.constant 0 : index
    %c0_25 = arith.constant 0 : index
    %38 = vector.load %arg4[%c2_23, %c0_24, %c0_25] : memref<9x128x128xbf16, #tpu.memory_space<vmem>>, vector<1x128x128xbf16>
    %39 = vector.shape_cast %38 : vector<1x128x128xbf16> to vector<128x128xbf16>
    %c3_26 = arith.constant 3 : index
    %c0_27 = arith.constant 0 : index
    %c0_28 = arith.constant 0 : index
    %40 = vector.load %arg4[%c3_26, %c0_27, %c0_28] : memref<9x128x128xbf16, #tpu.memory_space<vmem>>, vector<1x128x128xbf16>
    %41 = vector.shape_cast %40 : vector<1x128x128xbf16> to vector<128x128xbf16>
    %c4 = arith.constant 4 : index
    %c0_29 = arith.constant 0 : index
    %c0_30 = arith.constant 0 : index
    %42 = vector.load %arg4[%c4, %c0_29, %c0_30] : memref<9x128x128xbf16, #tpu.memory_space<vmem>>, vector<1x128x128xbf16>
    %43 = vector.shape_cast %42 : vector<1x128x128xbf16> to vector<128x128xbf16>
    %c4_31 = arith.constant 4 : index
    %c0_32 = arith.constant 0 : index
    %44 = vector.load %arg5[%c4_31, %c0_32] : memref<10x128xf32, #tpu.memory_space<vmem>>, vector<1x128xf32>
    %c5 = arith.constant 5 : index
    %c0_33 = arith.constant 0 : index
    %45 = vector.load %arg5[%c5, %c0_33] : memref<10x128xf32, #tpu.memory_space<vmem>>, vector<1x128xf32>
    %c6 = arith.constant 6 : index
    %c0_34 = arith.constant 0 : index
    %46 = vector.load %arg5[%c6, %c0_34] : memref<10x128xf32, #tpu.memory_space<vmem>>, vector<1x128xf32>
    %47 = arith.truncf %35 : vector<1x128xf32> to vector<1x128xbf16>
    %cst_35 = arith.constant dense<0.000000e+00> : vector<1x128xf32>
    %48 = tpu.matmul %47, %39, %cst_35 {dimension_numbers = #tpu.dot_dimension_numbers<[1], [0], [0], [1], [0, 0, 1, 1], [], []>} : vector<1x128xbf16>, vector<128x128xbf16>, vector<1x128xf32> -> vector<1x128xf32>
    %49 = arith.addf %48, %44 : vector<1x128xf32>
    %c0_36 = arith.constant 0 : index
    %c0_37 = arith.constant 0 : index
    %c0_38 = arith.constant 0 : index
    %50 = vector.load %arg2[%c0_36, %c0_37, %c0_38] : memref<1x8x128xf32, #tpu.memory_space<vmem>>, vector<1x8x128xf32>
    %51 = vector.shape_cast %50 : vector<1x8x128xf32> to vector<8x128xf32>
    %c0_i32 = arith.constant 0 : i32
    %c8_i32 = arith.constant 8 : i32
    %52 = arith.subi %c8_i32, %c0_i32 : i32
    %53 = arith.sitofp %52 : i32 to f32
    %cst_39 = arith.constant 1.250000e-01 : f32
    %54 = arith.mulf %53, %cst_39 : f32
    %55 = arith.truncf %51 : vector<8x128xf32> to vector<8x128xbf16>
    %cst_40 = arith.constant dense<0.000000e+00> : vector<8x128xf32>
    %56 = tpu.matmul %55, %41, %cst_40 {dimension_numbers = #tpu.dot_dimension_numbers<[1], [0], [0], [1], [0, 0, 1, 1], [], []>} : vector<8x128xbf16>, vector<128x128xbf16>, vector<8x128xf32> -> vector<8x128xf32>
    %57 = vector.broadcast %49 : vector<1x128xf32> to vector<8x128xf32>
    %58 = arith.addf %56, %57 : vector<8x128xf32>
    %59 = vector.broadcast %54 : f32 to vector<1x128xf32>
    %60 = arith.mulf %59, %45 : vector<1x128xf32>
    %61 = vector.broadcast %60 : vector<1x128xf32> to vector<8x128xf32>
    %62 = arith.addf %58, %61 : vector<8x128xf32>
    %cst_41 = arith.constant 0.000000e+00 : f32
    %63 = vector.broadcast %cst_41 : f32 to vector<8x128xf32>
    %64 = arith.maximumf %62, %63 : vector<8x128xf32>
    %65 = arith.truncf %64 : vector<8x128xf32> to vector<8x128xbf16>
    %cst_42 = arith.constant dense<0.000000e+00> : vector<8x128xf32>
    %66 = tpu.matmul %65, %43, %cst_42 {dimension_numbers = #tpu.dot_dimension_numbers<[1], [0], [0], [1], [0, 0, 1, 1], [], []>} : vector<8x128xbf16>, vector<128x128xbf16>, vector<8x128xf32> -> vector<8x128xf32>
    %67 = vector.broadcast %46 : vector<1x128xf32> to vector<8x128xf32>
    %68 = arith.addf %66, %67 : vector<8x128xf32>
    %cst_43 = arith.constant 1.250000e-01 : f32
    %69 = vector.broadcast %cst_43 : f32 to vector<8x128xf32>
    %70 = arith.mulf %69, %68 : vector<8x128xf32>
    %71 = arith.subf %51, %70 : vector<8x128xf32>
    %c1_i32 = arith.constant 1 : i32
    %c8_i32_44 = arith.constant 8 : i32
    %72 = arith.subi %c8_i32_44, %c1_i32 : i32
    %73 = arith.sitofp %72 : i32 to f32
    %cst_45 = arith.constant 1.250000e-01 : f32
    %74 = arith.mulf %73, %cst_45 : f32
    %75 = arith.truncf %71 : vector<8x128xf32> to vector<8x128xbf16>
    %cst_46 = arith.constant dense<0.000000e+00> : vector<8x128xf32>
    %76 = tpu.matmul %75, %41, %cst_46 {dimension_numbers = #tpu.dot_dimension_numbers<[1], [0], [0], [1], [0, 0, 1, 1], [], []>} : vector<8x128xbf16>, vector<128x128xbf16>, vector<8x128xf32> -> vector<8x128xf32>
    %77 = vector.broadcast %49 : vector<1x128xf32> to vector<8x128xf32>
    %78 = arith.addf %76, %77 : vector<8x128xf32>
    %79 = vector.broadcast %74 : f32 to vector<1x128xf32>
    %80 = arith.mulf %79, %45 : vector<1x128xf32>
    %81 = vector.broadcast %80 : vector<1x128xf32> to vector<8x128xf32>
    %82 = arith.addf %78, %81 : vector<8x128xf32>
    %cst_47 = arith.constant 0.000000e+00 : f32
    %83 = vector.broadcast %cst_47 : f32 to vector<8x128xf32>
    %84 = arith.maximumf %82, %83 : vector<8x128xf32>
    %85 = arith.truncf %84 : vector<8x128xf32> to vector<8x128xbf16>
    %cst_48 = arith.constant dense<0.000000e+00> : vector<8x128xf32>
    %86 = tpu.matmul %85, %43, %cst_48 {dimension_numbers = #tpu.dot_dimension_numbers<[1], [0], [0], [1], [0, 0, 1, 1], [], []>} : vector<8x128xbf16>, vector<128x128xbf16>, vector<8x128xf32> -> vector<8x128xf32>
    %87 = vector.broadcast %46 : vector<1x128xf32> to vector<8x128xf32>
    %88 = arith.addf %86, %87 : vector<8x128xf32>
    %cst_49 = arith.constant 1.250000e-01 : f32
    %89 = vector.broadcast %cst_49 : f32 to vector<8x128xf32>
    %90 = arith.mulf %89, %88 : vector<8x128xf32>
    %91 = arith.subf %71, %90 : vector<8x128xf32>
    %c2_i32 = arith.constant 2 : i32
    %c8_i32_50 = arith.constant 8 : i32
    %92 = arith.subi %c8_i32_50, %c2_i32 : i32
    %93 = arith.sitofp %92 : i32 to f32
    %cst_51 = arith.constant 1.250000e-01 : f32
    %94 = arith.mulf %93, %cst_51 : f32
    %95 = arith.truncf %91 : vector<8x128xf32> to vector<8x128xbf16>
    %cst_52 = arith.constant dense<0.000000e+00> : vector<8x128xf32>
    %96 = tpu.matmul %95, %41, %cst_52 {dimension_numbers = #tpu.dot_dimension_numbers<[1], [0], [0], [1], [0, 0, 1, 1], [], []>} : vector<8x128xbf16>, vector<128x128xbf16>, vector<8x128xf32> -> vector<8x128xf32>
    %97 = vector.broadcast %49 : vector<1x128xf32> to vector<8x128xf32>
    %98 = arith.addf %96, %97 : vector<8x128xf32>
    %99 = vector.broadcast %94 : f32 to vector<1x128xf32>
    %100 = arith.mulf %99, %45 : vector<1x128xf32>
    %101 = vector.broadcast %100 : vector<1x128xf32> to vector<8x128xf32>
    %102 = arith.addf %98, %101 : vector<8x128xf32>
    %cst_53 = arith.constant 0.000000e+00 : f32
    %103 = vector.broadcast %cst_53 : f32 to vector<8x128xf32>
    %104 = arith.maximumf %102, %103 : vector<8x128xf32>
    %105 = arith.truncf %104 : vector<8x128xf32> to vector<8x128xbf16>
    %cst_54 = arith.constant dense<0.000000e+00> : vector<8x128xf32>
    %106 = tpu.matmul %105, %43, %cst_54 {dimension_numbers = #tpu.dot_dimension_numbers<[1], [0], [0], [1], [0, 0, 1, 1], [], []>} : vector<8x128xbf16>, vector<128x128xbf16>, vector<8x128xf32> -> vector<8x128xf32>
    %107 = vector.broadcast %46 : vector<1x128xf32> to vector<8x128xf32>
    %108 = arith.addf %106, %107 : vector<8x128xf32>
    %cst_55 = arith.constant 1.250000e-01 : f32
    %109 = vector.broadcast %cst_55 : f32 to vector<8x128xf32>
    %110 = arith.mulf %109, %108 : vector<8x128xf32>
    %111 = arith.subf %91, %110 : vector<8x128xf32>
    %c3_i32 = arith.constant 3 : i32
    %c8_i32_56 = arith.constant 8 : i32
    %112 = arith.subi %c8_i32_56, %c3_i32 : i32
    %113 = arith.sitofp %112 : i32 to f32
    %cst_57 = arith.constant 1.250000e-01 : f32
    %114 = arith.mulf %113, %cst_57 : f32
    %115 = arith.truncf %111 : vector<8x128xf32> to vector<8x128xbf16>
    %cst_58 = arith.constant dense<0.000000e+00> : vector<8x128xf32>
    %116 = tpu.matmul %115, %41, %cst_58 {dimension_numbers = #tpu.dot_dimension_numbers<[1], [0], [0], [1], [0, 0, 1, 1], [], []>} : vector<8x128xbf16>, vector<128x128xbf16>, vector<8x128xf32> -> vector<8x128xf32>
    %117 = vector.broadcast %49 : vector<1x128xf32> to vector<8x128xf32>
    %118 = arith.addf %116, %117 : vector<8x128xf32>
    %119 = vector.broadcast %114 : f32 to vector<1x128xf32>
    %120 = arith.mulf %119, %45 : vector<1x128xf32>
    %121 = vector.broadcast %120 : vector<1x128xf32> to vector<8x128xf32>
    %122 = arith.addf %118, %121 : vector<8x128xf32>
    %cst_59 = arith.constant 0.000000e+00 : f32
    %123 = vector.broadcast %cst_59 : f32 to vector<8x128xf32>
    %124 = arith.maximumf %122, %123 : vector<8x128xf32>
    %125 = arith.truncf %124 : vector<8x128xf32> to vector<8x128xbf16>
    %cst_60 = arith.constant dense<0.000000e+00> : vector<8x128xf32>
    %126 = tpu.matmul %125, %43, %cst_60 {dimension_numbers = #tpu.dot_dimension_numbers<[1], [0], [0], [1], [0, 0, 1, 1], [], []>} : vector<8x128xbf16>, vector<128x128xbf16>, vector<8x128xf32> -> vector<8x128xf32>
    %127 = vector.broadcast %46 : vector<1x128xf32> to vector<8x128xf32>
    %128 = arith.addf %126, %127 : vector<8x128xf32>
    %cst_61 = arith.constant 1.250000e-01 : f32
    %129 = vector.broadcast %cst_61 : f32 to vector<8x128xf32>
    %130 = arith.mulf %129, %128 : vector<8x128xf32>
    %131 = arith.subf %111, %130 : vector<8x128xf32>
    %c4_i32 = arith.constant 4 : i32
    %c8_i32_62 = arith.constant 8 : i32
    %132 = arith.subi %c8_i32_62, %c4_i32 : i32
    %133 = arith.sitofp %132 : i32 to f32
    %cst_63 = arith.constant 1.250000e-01 : f32
    %134 = arith.mulf %133, %cst_63 : f32
    %135 = arith.truncf %131 : vector<8x128xf32> to vector<8x128xbf16>
    %cst_64 = arith.constant dense<0.000000e+00> : vector<8x128xf32>
    %136 = tpu.matmul %135, %41, %cst_64 {dimension_numbers = #tpu.dot_dimension_numbers<[1], [0], [0], [1], [0, 0, 1, 1], [], []>} : vector<8x128xbf16>, vector<128x128xbf16>, vector<8x128xf32> -> vector<8x128xf32>
    %137 = vector.broadcast %49 : vector<1x128xf32> to vector<8x128xf32>
    %138 = arith.addf %136, %137 : vector<8x128xf32>
    %139 = vector.broadcast %134 : f32 to vector<1x128xf32>
    %140 = arith.mulf %139, %45 : vector<1x128xf32>
    %141 = vector.broadcast %140 : vector<1x128xf32> to vector<8x128xf32>
    %142 = arith.addf %138, %141 : vector<8x128xf32>
    %cst_65 = arith.constant 0.000000e+00 : f32
    %143 = vector.broadcast %cst_65 : f32 to vector<8x128xf32>
    %144 = arith.maximumf %142, %143 : vector<8x128xf32>
    %145 = arith.truncf %144 : vector<8x128xf32> to vector<8x128xbf16>
    %cst_66 = arith.constant dense<0.000000e+00> : vector<8x128xf32>
    %146 = tpu.matmul %145, %43, %cst_66 {dimension_numbers = #tpu.dot_dimension_numbers<[1], [0], [0], [1], [0, 0, 1, 1], [], []>} : vector<8x128xbf16>, vector<128x128xbf16>, vector<8x128xf32> -> vector<8x128xf32>
    %147 = vector.broadcast %46 : vector<1x128xf32> to vector<8x128xf32>
    %148 = arith.addf %146, %147 : vector<8x128xf32>
    %cst_67 = arith.constant 1.250000e-01 : f32
    %149 = vector.broadcast %cst_67 : f32 to vector<8x128xf32>
    %150 = arith.mulf %149, %148 : vector<8x128xf32>
    %151 = arith.subf %131, %150 : vector<8x128xf32>
    %c5_i32 = arith.constant 5 : i32
    %c8_i32_68 = arith.constant 8 : i32
    %152 = arith.subi %c8_i32_68, %c5_i32 : i32
    %153 = arith.sitofp %152 : i32 to f32
    %cst_69 = arith.constant 1.250000e-01 : f32
    %154 = arith.mulf %153, %cst_69 : f32
    %155 = arith.truncf %151 : vector<8x128xf32> to vector<8x128xbf16>
    %cst_70 = arith.constant dense<0.000000e+00> : vector<8x128xf32>
    %156 = tpu.matmul %155, %41, %cst_70 {dimension_numbers = #tpu.dot_dimension_numbers<[1], [0], [0], [1], [0, 0, 1, 1], [], []>} : vector<8x128xbf16>, vector<128x128xbf16>, vector<8x128xf32> -> vector<8x128xf32>
    %157 = vector.broadcast %49 : vector<1x128xf32> to vector<8x128xf32>
    %158 = arith.addf %156, %157 : vector<8x128xf32>
    %159 = vector.broadcast %154 : f32 to vector<1x128xf32>
    %160 = arith.mulf %159, %45 : vector<1x128xf32>
    %161 = vector.broadcast %160 : vector<1x128xf32> to vector<8x128xf32>
    %162 = arith.addf %158, %161 : vector<8x128xf32>
    %cst_71 = arith.constant 0.000000e+00 : f32
    %163 = vector.broadcast %cst_71 : f32 to vector<8x128xf32>
    %164 = arith.maximumf %162, %163 : vector<8x128xf32>
    %165 = arith.truncf %164 : vector<8x128xf32> to vector<8x128xbf16>
    %cst_72 = arith.constant dense<0.000000e+00> : vector<8x128xf32>
    %166 = tpu.matmul %165, %43, %cst_72 {dimension_numbers = #tpu.dot_dimension_numbers<[1], [0], [0], [1], [0, 0, 1, 1], [], []>} : vector<8x128xbf16>, vector<128x128xbf16>, vector<8x128xf32> -> vector<8x128xf32>
    %167 = vector.broadcast %46 : vector<1x128xf32> to vector<8x128xf32>
    %168 = arith.addf %166, %167 : vector<8x128xf32>
    %cst_73 = arith.constant 1.250000e-01 : f32
    %169 = vector.broadcast %cst_73 : f32 to vector<8x128xf32>
    %170 = arith.mulf %169, %168 : vector<8x128xf32>
    %171 = arith.subf %151, %170 : vector<8x128xf32>
    %c6_i32 = arith.constant 6 : i32
    %c8_i32_74 = arith.constant 8 : i32
    %172 = arith.subi %c8_i32_74, %c6_i32 : i32
    %173 = arith.sitofp %172 : i32 to f32
    %cst_75 = arith.constant 1.250000e-01 : f32
    %174 = arith.mulf %173, %cst_75 : f32
    %175 = arith.truncf %171 : vector<8x128xf32> to vector<8x128xbf16>
    %cst_76 = arith.constant dense<0.000000e+00> : vector<8x128xf32>
    %176 = tpu.matmul %175, %41, %cst_76 {dimension_numbers = #tpu.dot_dimension_numbers<[1], [0], [0], [1], [0, 0, 1, 1], [], []>} : vector<8x128xbf16>, vector<128x128xbf16>, vector<8x128xf32> -> vector<8x128xf32>
    %177 = vector.broadcast %49 : vector<1x128xf32> to vector<8x128xf32>
    %178 = arith.addf %176, %177 : vector<8x128xf32>
    %179 = vector.broadcast %174 : f32 to vector<1x128xf32>
    %180 = arith.mulf %179, %45 : vector<1x128xf32>
    %181 = vector.broadcast %180 : vector<1x128xf32> to vector<8x128xf32>
    %182 = arith.addf %178, %181 : vector<8x128xf32>
    %cst_77 = arith.constant 0.000000e+00 : f32
    %183 = vector.broadcast %cst_77 : f32 to vector<8x128xf32>
    %184 = arith.maximumf %182, %183 : vector<8x128xf32>
    %185 = arith.truncf %184 : vector<8x128xf32> to vector<8x128xbf16>
    %cst_78 = arith.constant dense<0.000000e+00> : vector<8x128xf32>
    %186 = tpu.matmul %185, %43, %cst_78 {dimension_numbers = #tpu.dot_dimension_numbers<[1], [0], [0], [1], [0, 0, 1, 1], [], []>} : vector<8x128xbf16>, vector<128x128xbf16>, vector<8x128xf32> -> vector<8x128xf32>
    %187 = vector.broadcast %46 : vector<1x128xf32> to vector<8x128xf32>
    %188 = arith.addf %186, %187 : vector<8x128xf32>
    %cst_79 = arith.constant 1.250000e-01 : f32
    %189 = vector.broadcast %cst_79 : f32 to vector<8x128xf32>
    %190 = arith.mulf %189, %188 : vector<8x128xf32>
    %191 = arith.subf %171, %190 : vector<8x128xf32>
    %c7_i32 = arith.constant 7 : i32
    %c8_i32_80 = arith.constant 8 : i32
    %192 = arith.subi %c8_i32_80, %c7_i32 : i32
    %193 = arith.sitofp %192 : i32 to f32
    %cst_81 = arith.constant 1.250000e-01 : f32
    %194 = arith.mulf %193, %cst_81 : f32
    %195 = arith.truncf %191 : vector<8x128xf32> to vector<8x128xbf16>
    %cst_82 = arith.constant dense<0.000000e+00> : vector<8x128xf32>
    %196 = tpu.matmul %195, %41, %cst_82 {dimension_numbers = #tpu.dot_dimension_numbers<[1], [0], [0], [1], [0, 0, 1, 1], [], []>} : vector<8x128xbf16>, vector<128x128xbf16>, vector<8x128xf32> -> vector<8x128xf32>
    %197 = vector.broadcast %49 : vector<1x128xf32> to vector<8x128xf32>
    %198 = arith.addf %196, %197 : vector<8x128xf32>
    %199 = vector.broadcast %194 : f32 to vector<1x128xf32>
    %200 = arith.mulf %199, %45 : vector<1x128xf32>
    %201 = vector.broadcast %200 : vector<1x128xf32> to vector<8x128xf32>
    %202 = arith.addf %198, %201 : vector<8x128xf32>
    %cst_83 = arith.constant 0.000000e+00 : f32
    %203 = vector.broadcast %cst_83 : f32 to vector<8x128xf32>
    %204 = arith.maximumf %202, %203 : vector<8x128xf32>
    %205 = arith.truncf %204 : vector<8x128xf32> to vector<8x128xbf16>
    %cst_84 = arith.constant dense<0.000000e+00> : vector<8x128xf32>
    %206 = tpu.matmul %205, %43, %cst_84 {dimension_numbers = #tpu.dot_dimension_numbers<[1], [0], [0], [1], [0, 0, 1, 1], [], []>} : vector<8x128xbf16>, vector<128x128xbf16>, vector<8x128xf32> -> vector<8x128xf32>
    %207 = vector.broadcast %46 : vector<1x128xf32> to vector<8x128xf32>
    %208 = arith.addf %206, %207 : vector<8x128xf32>
    %cst_85 = arith.constant 1.250000e-01 : f32
    %209 = vector.broadcast %cst_85 : f32 to vector<8x128xf32>
    %210 = arith.mulf %209, %208 : vector<8x128xf32>
    %211 = arith.subf %191, %210 : vector<8x128xf32>
    %c8_i32_86 = arith.constant 8 : i32
    %212 = tpu.iota {dimensions = array<i32: 1>} : vector<8x128xi32>
    %c3_i32_87 = arith.constant 3 : i32
    %213 = vector.broadcast %c3_i32_87 : i32 to vector<8x128xi32>
    %214 = arith.cmpi sge, %212, %213 : vector<8x128xi32>
    %c7_i32_88 = arith.constant 7 : i32
    %215 = vector.broadcast %c7_i32_88 : i32 to vector<8x128xi32>
    %216 = arith.cmpi slt, %212, %215 : vector<8x128xi32>
    %217 = arith.andi %214, %216 : vector<8x128xi1>
    %218 = arith.mulf %211, %211 : vector<8x128xf32>
    %cst_89 = arith.constant 0.000000e+00 : f32
    %219 = vector.broadcast %cst_89 : f32 to vector<8x128xf32>
    %220 = arith.select %217, %218, %219 : vector<8x128xi1>, vector<8x128xf32>
    %cst_90 = arith.constant dense<0.000000e+00> : vector<8xf32>
    %221 = vector.multi_reduction <add>, %220, %cst_90 [1] : vector<8x128xf32> to vector<8xf32>
    %222 = vector.shape_cast %221 : vector<8xf32> to vector<8x1xf32>
    %cst_91 = arith.constant 9.99999993E-9 : f32
    %223 = vector.broadcast %cst_91 : f32 to vector<8x1xf32>
    %224 = arith.addf %222, %223 : vector<8x1xf32>
    %225 = math.rsqrt %224 : vector<8x1xf32>
    %cst_92 = arith.constant 1.000000e+00 : f32
    %226 = vector.shape_cast %225 : vector<8x1xf32> to vector<8x1xf32>
    %227 = vector.broadcast %226 : vector<8x1xf32> to vector<8x128xf32>
    %228 = vector.broadcast %cst_92 : f32 to vector<8x128xf32>
    %229 = arith.select %217, %227, %228 : vector<8x128xi1>, vector<8x128xf32>
    %230 = arith.mulf %211, %229 : vector<8x128xf32>
    %231 = arith.truncf %37 : vector<1x128xf32> to vector<1x128xbf16>
    %c5_93 = arith.constant 5 : index
    %c0_94 = arith.constant 0 : index
    %c0_95 = arith.constant 0 : index
    %232 = vector.load %arg4[%c5_93, %c0_94, %c0_95] : memref<9x128x128xbf16, #tpu.memory_space<vmem>>, vector<1x128x128xbf16>
    %233 = vector.shape_cast %232 : vector<1x128x128xbf16> to vector<128x128xbf16>
    %cst_96 = arith.constant dense<0.000000e+00> : vector<1x128xf32>
    %234 = tpu.matmul %231, %233, %cst_96 {dimension_numbers = #tpu.dot_dimension_numbers<[1], [0], [0], [1], [0, 0, 1, 1], [], []>} : vector<1x128xbf16>, vector<128x128xbf16>, vector<1x128xf32> -> vector<1x128xf32>
    %235 = arith.truncf %230 : vector<8x128xf32> to vector<8x128xbf16>
    %c6_97 = arith.constant 6 : index
    %c0_98 = arith.constant 0 : index
    %c0_99 = arith.constant 0 : index
    %236 = vector.load %arg4[%c6_97, %c0_98, %c0_99] : memref<9x128x128xbf16, #tpu.memory_space<vmem>>, vector<1x128x128xbf16>
    %237 = vector.shape_cast %236 : vector<1x128x128xbf16> to vector<128x128xbf16>
    %cst_100 = arith.constant dense<0.000000e+00> : vector<8x128xf32>
    %238 = tpu.matmul %235, %237, %cst_100 {dimension_numbers = #tpu.dot_dimension_numbers<[1], [0], [0], [1], [0, 0, 1, 1], [], []>} : vector<8x128xbf16>, vector<128x128xbf16>, vector<8x128xf32> -> vector<8x128xf32>
    %239 = vector.broadcast %234 : vector<1x128xf32> to vector<8x128xf32>
    %240 = arith.addf %238, %239 : vector<8x128xf32>
    %c7 = arith.constant 7 : index
    %c0_101 = arith.constant 0 : index
    %241 = vector.load %arg5[%c7, %c0_101] : memref<10x128xf32, #tpu.memory_space<vmem>>, vector<1x128xf32>
    %242 = vector.broadcast %241 : vector<1x128xf32> to vector<8x128xf32>
    %243 = arith.addf %240, %242 : vector<8x128xf32>
    %cst_102 = arith.constant 0.000000e+00 : f32
    %244 = vector.broadcast %cst_102 : f32 to vector<8x128xf32>
    %245 = arith.maximumf %243, %244 : vector<8x128xf32>
    %246 = arith.truncf %245 : vector<8x128xf32> to vector<8x128xbf16>
    %c7_103 = arith.constant 7 : index
    %c0_104 = arith.constant 0 : index
    %c0_105 = arith.constant 0 : index
    %247 = vector.load %arg4[%c7_103, %c0_104, %c0_105] : memref<9x128x128xbf16, #tpu.memory_space<vmem>>, vector<1x128x128xbf16>
    %248 = vector.shape_cast %247 : vector<1x128x128xbf16> to vector<128x128xbf16>
    %cst_106 = arith.constant dense<0.000000e+00> : vector<8x128xf32>
    %249 = tpu.matmul %246, %248, %cst_106 {dimension_numbers = #tpu.dot_dimension_numbers<[1], [0], [0], [1], [0, 0, 1, 1], [], []>} : vector<8x128xbf16>, vector<128x128xbf16>, vector<8x128xf32> -> vector<8x128xf32>
    %c8 = arith.constant 8 : index
    %c0_107 = arith.constant 0 : index
    %250 = vector.load %arg5[%c8, %c0_107] : memref<10x128xf32, #tpu.memory_space<vmem>>, vector<1x128xf32>
    %251 = vector.broadcast %250 : vector<1x128xf32> to vector<8x128xf32>
    %252 = arith.addf %249, %251 : vector<8x128xf32>
    %cst_108 = arith.constant 0.000000e+00 : f32
    %253 = vector.broadcast %cst_108 : f32 to vector<8x128xf32>
    %254 = arith.maximumf %252, %253 : vector<8x128xf32>
    %255 = arith.truncf %254 : vector<8x128xf32> to vector<8x128xbf16>
    %c8_109 = arith.constant 8 : index
    %c0_110 = arith.constant 0 : index
    %c0_111 = arith.constant 0 : index
    %256 = vector.load %arg4[%c8_109, %c0_110, %c0_111] : memref<9x128x128xbf16, #tpu.memory_space<vmem>>, vector<1x128x128xbf16>
    %257 = vector.shape_cast %256 : vector<1x128x128xbf16> to vector<128x128xbf16>
    %cst_112 = arith.constant dense<0.000000e+00> : vector<8x128xf32>
    %258 = tpu.matmul %255, %257, %cst_112 {dimension_numbers = #tpu.dot_dimension_numbers<[1], [0], [0], [1], [0, 0, 1, 1], [], []>} : vector<8x128xbf16>, vector<128x128xbf16>, vector<8x128xf32> -> vector<8x128xf32>
    %c9 = arith.constant 9 : index
    %c0_113 = arith.constant 0 : index
    %259 = vector.load %arg5[%c9, %c0_113] : memref<10x128xf32, #tpu.memory_space<vmem>>, vector<1x128xf32>
    %260 = vector.broadcast %259 : vector<1x128xf32> to vector<8x128xf32>
    %261 = arith.addf %258, %260 : vector<8x128xf32>
    %cst_114 = arith.constant 5.000000e-01 : f32
    %262 = vector.broadcast %cst_114 : f32 to vector<8x128xf32>
    %263 = arith.mulf %262, %261 : vector<8x128xf32>
    %264 = math.tanh %263 : vector<8x128xf32>
    %cst_115 = arith.constant 1.000000e+00 : f32
    %265 = vector.broadcast %cst_115 : f32 to vector<8x128xf32>
    %266 = arith.addf %264, %265 : vector<8x128xf32>
    %cst_116 = arith.constant 5.000000e-01 : f32
    %267 = vector.broadcast %cst_116 : f32 to vector<8x128xf32>
    %268 = arith.mulf %267, %266 : vector<8x128xf32>
    %c7_i32_117 = arith.constant 7 : i32
    %269 = vector.broadcast %c7_i32_117 : i32 to vector<8x128xi32>
    %270 = arith.cmpi eq, %212, %269 : vector<8x128xi32>
    %271 = arith.select %270, %268, %230 : vector<8x128xi1>, vector<8x128xf32>
    %c0_118 = arith.constant 0 : index
    %c0_119 = arith.constant 0 : index
    %c0_120 = arith.constant 0 : index
    %272 = vector.load %arg6[%c0_118, %c0_119, %c0_120] : memref<1x8x128xf32, #tpu.memory_space<vmem>>, vector<1x8x128xf32>
    %273 = vector.shape_cast %272 : vector<1x8x128xf32> to vector<8x128xf32>
    %274 = vector.shape_cast %271 : vector<8x128xf32> to vector<1x8x128xf32>
    tpu.vector_store %arg6[%c0_118, %c0_119, %c0_120], %274 {strides = array<i32>} : memref<1x8x128xf32, #tpu.memory_space<vmem>>, vector<1x8x128xf32>,
    return
  }
  func.func @transform_0(%arg0: i32) -> (i32, i32, i32) {
    %c0_i32 = arith.constant 0 : i32
    %c0_i32_0 = arith.constant 0 : i32
    %c0_i32_1 = arith.constant 0 : i32
    return %arg0, %c0_i32, %c0_i32_0 : i32, i32, i32
  }
  func.func @transform_1(%arg0: i32) -> (i32, i32, i32) {
    %c0_i32 = arith.constant 0 : i32
    %c0_i32_0 = arith.constant 0 : i32
    %c0_i32_1 = arith.constant 0 : i32
    return %arg0, %c0_i32, %c0_i32_0 : i32, i32, i32
  }
  func.func @transform_2(%arg0: i32) -> (i32, i32) {
    %c0_i32 = arith.constant 0 : i32
    %c0_i32_0 = arith.constant 0 : i32
    %c0_i32_1 = arith.constant 0 : i32
    return %c0_i32, %c0_i32_0 : i32, i32
  }
  func.func @transform_3(%arg0: i32) -> (i32, i32, i32) {
    %c0_i32 = arith.constant 0 : i32
    %c0_i32_0 = arith.constant 0 : i32
    %c0_i32_1 = arith.constant 0 : i32
    %c0_i32_2 = arith.constant 0 : i32
    return %c0_i32, %c0_i32_0, %c0_i32_1 : i32, i32, i32
  }
  func.func @transform_4(%arg0: i32) -> (i32, i32) {
    %c0_i32 = arith.constant 0 : i32
    %c0_i32_0 = arith.constant 0 : i32
    %c0_i32_1 = arith.constant 0 : i32
    return %c0_i32, %c0_i32_0 : i32, i32
  }
  func.func @transform_5(%arg0: i32) -> (i32, i32, i32) {
    %c0_i32 = arith.constant 0 : i32
    %c0_i32_0 = arith.constant 0 : i32
    %c0_i32_1 = arith.constant 0 : i32
    return %arg0, %c0_i32, %c0_i32_0 : i32, i32, i32
  }
}

</mosaic_0001>

<bundles_post_ra>
// kernel: _forward_impl.1
= control target key start
LH: loop header
LB: loop body
LE: loop exit
PB: predicated region body
PF: predicated region fallthrough
CT: control target
= control target key end

     0   :  { %s2742_s18 = smov 0   ;;  %s3567_s0 = inlined_call_operand.vmem [shape: f32[2,256,8], index: 0, kind: input, shape index: {}]   ;;  %s3568_s1 = inlined_call_operand.vmem [shape: f32[2,8,128], index: 1, kind: input, shape index: {}]   ;;  %s3569_s2 = inlined_call_operand.vmem [shape: f32[8,256], index: 2, kind: input, shape index: {}]   ;;  %s3570_s3 = inlined_call_operand.vmem [shape: bf16[9,128,128], index: 3, kind: input, shape index: {}]   ;;  %s3571_s4 = inlined_call_operand.vmem [shape: f32[10,128], index: 4, kind: input, shape index: {}]   ;;  %s3572_s5 = inlined_call_operand.vmem [shape: f32[2,8,128], index: 5, kind: output, shape index: {}]  }
   0x1 LB: > { %s2116_s19 = sadd.s32 4294967295, %s2710_s18   ;;  %p2120_p0 = scmp.ge.s32.totalorder %s2710_s18, 1  ;;  %s2710_s18 = sphi %s2742_s18, %s15_s18  }
   0x2   : > { %p196_p1 = scmp.lt.s32.totalorder %s2710_s18, 3 }
   0x4   : > { %p197_p2 = pnand %p2120_p0, %p196_p1 }
   0x5   : > { %p227_p3 = scmp.lt.s32.totalorder (!%p197_p2), %s2116_s19, 1 }
   0x6   : > { %200 = sbr.rel (%p197_p2) target bundleno = 3318 (0xcf6), region = 40 }
   0xb   : > { %v272_v0 = vld [vmem:[%s3569_s2] sm:$0xff]  ;;  %s3576_s19 = smov (!%p227_p3, %s2116_s19), 1  ;;  %vm274_vm0 = vcmask 64512   ;;  %v273_v4 = vld [vmem:[%s3569_s2 + $0x8] sm:$0xff]  ;;  %v2615_v13 = vld [vmem:[%s3570_s3 + $0x38] sm:$0xff] }
   0xc   : > { %386 = vmatpush.msra.mxu0 %v272_v0  ;;  %2680 = vmatpush.msra.mxu1 %v272_v0  ;;  %s2607_s22 = sshll.u32 %s3576_s19, 8  ;;  %v2614_v15 = vld [vmem:[%s3570_s3 + $0x30] sm:$0xff]  ;;  %v2613_v16 = vld [vmem:[%s3570_s3 + $0x28] sm:$0xff]  ;;  %v2612_v18 = vld [vmem:[%s3570_s3 + $0x20] sm:$0xff]  ;;  %s2123_s13 = sshll.u32 %s3576_s19, 3 }
   0xd   : > { %s2759_s25 = scalar_lea.vmem %s3567_s0, %s2607_s22  ;;  %811 = vmatpush.bf16.msra.mxu2 %v2615_v13  ;;  %v2611_v19 = vld [vmem:[%s3570_s3 + $0x18] sm:$0xff]  ;;  %v2610_v21 = vld [vmem:[%s3570_s3 + $0x10] sm:$0xff]  ;;  %v2609_v22 = vld [vmem:[%s3570_s3 + $0x8] sm:$0xff]  ;;  %s235_s16 = scalar_lea.vmem %s3568_s1, %s2123_s13 }
   0xe   : > { %v240_v1 = vld [vmem:[%s2759_s25] sm:$0xff]  ;;  %v2764_v2 = vld [vmem:[%s2759_s25 + $0xf8] sm:$0xff]  ;;  %v241_v3 = vld [vmem:[%s2759_s25 + $0x8] sm:$0xff]  ;;  %499 = vmatpush.msrb.mxu1 %v273_v4  ;;  %s239_s24 = scalar_lea.vmem %s3572_s5, %s2123_s13 }
   0xf   : > { %2125 = vmatmul.msk.f32.vlgmr.msra.gmra.mxu0 %vm274_vm0, %v240_v1  ;;  %2156 = vmatmul.msk.f32.vlgmr.msra.gmra.mxu1 %vm274_vm0, %v2764_v2  ;;  %v242_v5 = vld [vmem:[%s2759_s25 + $0x10] sm:$0xff]  ;;  %v243_v6 = vld [vmem:[%s2759_s25 + $0x18] sm:$0xff]  ;;  %v244_v7 = vld [vmem:[%s2759_s25 + $0x20] sm:$0xff] }
  0x10   : > { %v245_v8 = vld [vmem:[%s2759_s25 + $0x28] sm:$0xff]  ;;  %v246_v9 = vld [vmem:[%s2759_s25 + $0x30] sm:$0xff]  ;;  %v247_v10 = vld [vmem:[%s2759_s25 + $0x38] sm:$0xff] }
  0x11   : > { %v248_v11 = vld [vmem:[%s2759_s25 + $0x40] sm:$0xff]  ;;  %v249_v12 = vld [vmem:[%s2759_s25 + $0x48] sm:$0xff]  ;;  %v250_v14 = vld [vmem:[%s2759_s25 + $0x50] sm:$0xff]  ;;  %812 = vmatpush.bf16.msra.mxu2 %v2614_v15 }
  0x12   : > { %v251_v17 = vld [vmem:[%s2759_s25 + $0x58] sm:$0xff]  ;;  %v252_v20 = vld [vmem:[%s2759_s25 + $0x60] sm:$0xff]  ;;  %v253_v23 = vld [vmem:[%s2759_s25 + $0x68] sm:$0xff] }
  0x13   : > { %v2608_v24 = vld [vmem:[%s3570_s3] sm:$0xff]  ;;  %v254_v25 = vld [vmem:[%s2759_s25 + $0x70] sm:$0xff]  ;;  %v255_v26 = vld [vmem:[%s2759_s25 + $0x78] sm:$0xff] }
  0x14   : > { %v2623_v27 = vld [vmem:[%s3570_s3 + $0x78] sm:$0xff]  ;;  %v2622_v28 = vld [vmem:[%s3570_s3 + $0x70] sm:$0xff]  ;;  %v256_v30 = vld [vmem:[%s2759_s25 + $0x80] sm:$0xff] }
  0x15   : > { %813 = vmatpush.bf16.msra.mxu2 %v2613_v16  ;;  %1015 = vmatpush.bf16.msra.mxu3 %v2623_v27  ;;  %v2621_v31 = vld [vmem:[%s3570_s3 + $0x68] sm:$0xff]  ;;  %v2855_v33 = vld [vmem:[%s3571_s4] ss:$0 sm:$0xff]  ;;  %v2619_v38 = vld [vmem:[%s3570_s3 + $0x58] sm:$0xff] }
  0x16   : > { %v2620_v34 = vld [vmem:[%s3570_s3 + $0x60] sm:$0xff]  ;;  %v257_v37 = vld [vmem:[%s2759_s25 + $0x88] sm:$0xff]  ;;  %v2618_v44 = vld [vmem:[%s3570_s3 + $0x50] sm:$0xff] }
  0x17   : > { %2126 = vmatmul.msk.f32.gmra.mxu0 %vm274_vm0, %v241_v3  ;;  %2157 = vmatmul.msk.f32.vlgmr.msrb.gmra.mxu1 %vm274_vm0, %v240_v1  ;;  %v2872_v43 = vld [vmem:[%s3571_s4 + $0x1] ss:$0 sm:$0xff]  ;;  %v258_v48 = vld [vmem:[%s2759_s25 + $0x90] sm:$0xff]  ;;  %v2617_v49 = vld [vmem:[%s3570_s3 + $0x48] sm:$0xff] }
  0x18   : > { %v2616_v53 = vld [vmem:[%s3570_s3 + $0x40] sm:$0xff]  ;;  %v259_v58 = vld [vmem:[%s2759_s25 + $0x98] sm:$0xff] }
  0x19   : > { %814 = vmatpush.bf16.msra.mxu2 %v2612_v18  ;;  %1016 = vmatpush.bf16.msra.mxu3 %v2622_v28  ;;  %v263_v27 = vld [vmem:[%s2759_s25 + $0xb8] sm:$0xff] }
  0x1d   : > { %815 = vmatpush.bf16.msra.mxu2 %v2611_v19  ;;  %1017 = vmatpush.bf16.msra.mxu3 %v2621_v31  ;;  %v262_v19 = vld [vmem:[%s2759_s25 + $0xb0] sm:$0xff] }
  0x1f   : > { %2127 = vmatmul.msk.f32.gmra.mxu0 %vm274_vm0, %v242_v5  ;;  %2158 = vmatmul.msk.f32.gmra.mxu1 %vm274_vm0, %v241_v3  ;;  %v260_v3 = vld [vmem:[%s2759_s25 + $0xa0] sm:$0xff] }
  0x21   : > { %816 = vmatpush.bf16.msra.mxu2 %v2610_v21  ;;  %1018 = vmatpush.bf16.msra.mxu3 %v2620_v34 }
  0x25   : > { %817 = vmatpush.bf16.msra.mxu2 %v2609_v22  ;;  %1019 = vmatpush.bf16.msra.mxu3 %v2619_v38 }
  0x27   : > { %2128 = vmatmul.msk.f32.gmra.mxu0 %vm274_vm0, %v243_v6  ;;  %2159 = vmatmul.msk.f32.gmra.mxu1 %vm274_vm0, %v242_v5 }
  0x29   : > { %818 = vmatpush.bf16.msra.mxu2 %v2608_v24  ;;  %1020 = vmatpush.bf16.msra.mxu3 %v2618_v44 }
  0x2d   : > { %1021 = vmatpush.bf16.msra.mxu3 %v2617_v49 }
  0x2f   : > { %2129 = vmatmul.msk.f32.gmra.mxu0 %vm274_vm0, %v244_v7  ;;  %2160 = vmatmul.msk.f32.gmra.mxu1 %vm274_vm0, %v243_v6 }
  0x31   : > { %1022 = vmatpush.bf16.msra.mxu3 %v2616_v53 }
  0x37   : > { %2130 = vmatmul.msk.f32.gmra.mxu0 %vm274_vm0, %v245_v8  ;;  %2161 = vmatmul.msk.f32.gmra.mxu1 %vm274_vm0, %v244_v7 }
  0x3f   : > { %2131 = vmatmul.msk.f32.gmra.mxu0 %vm274_vm0, %v246_v9  ;;  %2162 = vmatmul.msk.f32.gmra.mxu1 %vm274_vm0, %v245_v8 }
  0x47   : > { %2132 = vmatmul.msk.f32.gmra.mxu0 %vm274_vm0, %v247_v10  ;;  %2163 = vmatmul.msk.f32.gmra.mxu1 %vm274_vm0, %v246_v9 }
  0x4f   : > { %2133 = vmatmul.msk.f32.gmra.mxu0 %vm274_vm0, %v248_v11  ;;  %2164 = vmatmul.msk.f32.gmra.mxu1 %vm274_vm0, %v247_v10 }
  0x57   : > { %2134 = vmatmul.msk.f32.gmra.mxu0 %vm274_vm0, %v249_v12  ;;  %2165 = vmatmul.msk.f32.gmra.mxu1 %vm274_vm0, %v248_v11  ;;  %v261_v11 = vld [vmem:[%s2759_s25 + $0xa8] sm:$0xff] }
  0x5f   : > { %2135 = vmatmul.msk.f32.gmra.mxu0 %vm274_vm0, %v250_v14  ;;  %2166 = vmatmul.msk.f32.gmra.mxu1 %vm274_vm0, %v249_v12 }
  0x67   : > { %2136 = vmatmul.msk.f32.gmra.mxu0 %vm274_vm0, %v251_v17  ;;  %2167 = vmatmul.msk.f32.gmra.mxu1 %vm274_vm0, %v250_v14 }
  0x6f   : > { %2137 = vmatmul.msk.f32.gmra.mxu0 %vm274_vm0, %v252_v20  ;;  %2168 = vmatmul.msk.f32.gmra.mxu1 %vm274_vm0, %v251_v17 }
  0x77   : > { %2138 = vmatmul.msk.f32.gmra.mxu0 %vm274_vm0, %v253_v23  ;;  %2169 = vmatmul.msk.f32.gmra.mxu1 %vm274_vm0, %v252_v20 }
  0x7f   : > { %2139 = vmatmul.msk.f32.gmra.mxu0 %vm274_vm0, %v254_v25  ;;  %2170 = vmatmul.msk.f32.gmra.mxu1 %vm274_vm0, %v253_v23 }
  0x87   : > { %2140 = vmatmul.msk.f32.gmra.mxu0 %vm274_vm0, %v255_v26  ;;  %2171 = vmatmul.msk.f32.gmra.mxu1 %vm274_vm0, %v254_v25 }
  0x8c   : > { %v388_v29 = vpop.f32.mrf.mxu0  ;;  %v2850_v32 = vpop.f32.mrf.mxu1 }
  0x8d   : > { %v599_v35 = vadd.f32 %v2855_v33, %v388_v29 }
  0x8f   : > { %2141 = vmatmul.msk.f32.gmra.mxu0 %vm274_vm0, %v256_v30  ;;  %2172 = vmatmul.msk.f32.gmra.mxu1 %vm274_vm0, %v255_v26  ;;  %v631_v41 = vmax.f32 %v599_v35, 0.0 }
  0x94   : > { %v391_v36 = vpop.f32.mrf.mxu0  ;;  %v501_v40 = vpop.f32.mrf.mxu1 }
  0x95   : > { %v600_v39 = vadd.f32 %v2855_v33, %v391_v36  ;;  %v665_v46 = vadd.f32 %v2872_v43, %v501_v40 }
  0x97   : > { %v632_v42 = vmax.f32 %v600_v39, 0.0  ;;  %2142 = vmatmul.msk.f32.gmra.mxu0 %vm274_vm0, %v257_v37  ;;  %2173 = vmatmul.msk.f32.gmra.mxu1 %vm274_vm0, %v256_v30  ;;  %v697_v51 = vmax.f32 %v665_v46, 0.0  ;;  %v265_v46 = vld [vmem:[%s2759_s25 + $0xc8] sm:$0xff] }
  0x99   : > { %v729_v45 = vpack.c.bf16 %v632_v42, %v631_v41 }
  0x9b   : > { %819 = vmatmul.bf16.vlgmr.msra.gmra.mxu2 %v729_v45 }
  0x9c   : > { %v394_v47 = vpop.f32.mrf.mxu0  ;;  %v504_v50 = vpop.f32.mrf.mxu1 }
  0x9d   : > { %v666_v52 = vadd.f32 %v2872_v43, %v504_v50  ;;  %v601_v55 = vadd.f32 %v2855_v33, %v394_v47 }
  0x9f   : > { %2143 = vmatmul.msk.f32.gmra.mxu0 %vm274_vm0, %v258_v48  ;;  %v698_v54 = vmax.f32 %v666_v52, 0.0  ;;  %2174 = vmatmul.msk.f32.gmra.mxu1 %vm274_vm0, %v257_v37  ;;  %v633_v61 = vmax.f32 %v601_v55, 0.0  ;;  %v264_v37 = vld [vmem:[%s2759_s25 + $0xc0] sm:$0xff] }
  0xa1   : > { %v932_v56 = vpack.c.bf16 %v698_v54, %v697_v51  ;;  %v266_v54 = vld [vmem:[%s2759_s25 + $0xd0] sm:$0xff] }
  0xa3   : > { %1023 = vmatmul.bf16.vlgmr.msra.gmra.mxu3 %v932_v56 }
  0xa4   : > { %v397_v57 = vpop.f32.mrf.mxu0  ;;  %v507_v60 = vpop.f32.mrf.mxu1 }
  0xa5   : > { %v602_v59 = vadd.f32 %v2855_v33, %v397_v57  ;;  %v667_v0 = vadd.f32 %v2872_v43, %v507_v60 }
  0xa7   : > { %v634_v62 = vmax.f32 %v602_v59, 0.0  ;;  %2144 = vmatmul.msk.f32.gmra.mxu0 %vm274_vm0, %v259_v58  ;;  %2175 = vmatmul.msk.f32.gmra.mxu1 %vm274_vm0, %v258_v48  ;;  %v699_v5 = vmax.f32 %v667_v0, 0.0 }
  0xa9   : > { %v730_v63 = vpack.c.bf16 %v634_v62, %v633_v61  ;;  %v267_v62 = vld [vmem:[%s2759_s25 + $0xd8] sm:$0xff] }
  0xab   : > { %824 = vmatmul.bf16.gmra.mxu2 %v730_v63 }
  0xac   : > { %v400_v1 = vpop.f32.mrf.mxu0  ;;  %v510_v4 = vpop.f32.mrf.mxu1 }
  0xad   : > { %v668_v6 = vadd.f32 %v2872_v43, %v510_v4  ;;  %v603_v8 = vadd.f32 %v2855_v33, %v400_v1 }
  0xaf   : > { %2145 = vmatmul.msk.f32.gmra.mxu0 %vm274_vm0, %v260_v3  ;;  %v700_v7 = vmax.f32 %v668_v6, 0.0  ;;  %2176 = vmatmul.msk.f32.gmra.mxu1 %vm274_vm0, %v259_v58  ;;  %v635_v14 = vmax.f32 %v603_v8, 0.0 }
  0xb1   : > { %v933_v9 = vpack.c.bf16 %v700_v7, %v699_v5  ;;  %v268_v7 = vld [vmem:[%s2759_s25 + $0xe0] sm:$0xff] }
  0xb3   : > { %1028 = vmatmul.bf16.gmra.mxu3 %v933_v9 }
  0xb4   : > { %v403_v10 = vpop.f32.mrf.mxu0  ;;  %v513_v13 = vpop.f32.mrf.mxu1 }
  0xb5   : > { %v604_v12 = vadd.f32 %v2855_v33, %v403_v10  ;;  %v669_v17 = vadd.f32 %v2872_v43, %v513_v13 }
  0xb7   : > { %v636_v15 = vmax.f32 %v604_v12, 0.0  ;;  %2146 = vmatmul.msk.f32.gmra.mxu0 %vm274_vm0, %v261_v11  ;;  %2177 = vmatmul.msk.f32.gmra.mxu1 %vm274_vm0, %v260_v3  ;;  %v701_v21 = vmax.f32 %v669_v17, 0.0 }
  0xb9   : > { %v731_v16 = vpack.c.bf16 %v636_v15, %v635_v14  ;;  %v269_v15 = vld [vmem:[%s2759_s25 + $0xe8] sm:$0xff] }
  0xbb   : > { %829 = vmatmul.bf16.gmra.mxu2 %v731_v16 }
  0xbc   : > { %v406_v18 = vpop.f32.mrf.mxu0  ;;  %v516_v20 = vpop.f32.mrf.mxu1 }
  0xbd   : > { %v670_v22 = vadd.f32 %v2872_v43, %v516_v20  ;;  %v605_v24 = vadd.f32 %v2855_v33, %v406_v18 }
  0xbf   : > { %2147 = vmatmul.msk.f32.gmra.mxu0 %vm274_vm0, %v262_v19  ;;  %v702_v23 = vmax.f32 %v670_v22, 0.0  ;;  %2178 = vmatmul.msk.f32.gmra.mxu1 %vm274_vm0, %v261_v11  ;;  %v637_v30 = vmax.f32 %v605_v24, 0.0 }
  0xc1   : > { %v934_v25 = vpack.c.bf16 %v702_v23, %v701_v21  ;;  %v270_v23 = vld [vmem:[%s2759_s25 + $0xf0] sm:$0xff] }
  0xc3   : > { %1033 = vmatmul.bf16.gmra.mxu3 %v934_v25 }
  0xc4   : > { %v409_v26 = vpop.f32.mrf.mxu0  ;;  %v519_v29 = vpop.f32.mrf.mxu1 }
  0xc5   : > { %v606_v28 = vadd.f32 %v2855_v33, %v409_v26  ;;  %v671_v35 = vadd.f32 %v2872_v43, %v519_v29 }
  0xc7   : > { %v638_v31 = vmax.f32 %v606_v28, 0.0  ;;  %2148 = vmatmul.msk.f32.gmra.mxu0 %vm274_vm0, %v263_v27  ;;  %2179 = vmatmul.msk.f32.gmra.mxu1 %vm274_vm0, %v262_v19  ;;  %v703_v39 = vmax.f32 %v671_v35, 0.0 }
  0xc9   : > { %v732_v34 = vpack.c.bf16 %v638_v31, %v637_v30 }
  0xcb   : > { %834 = vmatmul.bf16.gmra.mxu2 %v732_v34 }
  0xcc   : > { %v412_v36 = vpop.f32.mrf.mxu0  ;;  %v522_v38 = vpop.f32.mrf.mxu1 }
  0xcd   : > { %v672_v40 = vadd.f32 %v2872_v43, %v522_v38  ;;  %v607_v42 = vadd.f32 %v2855_v33, %v412_v36 }
  0xcf   : > { %2149 = vmatmul.msk.f32.gmra.mxu0 %vm274_vm0, %v264_v37  ;;  %v704_v41 = vmax.f32 %v672_v40, 0.0  ;;  %2180 = vmatmul.msk.f32.gmra.mxu1 %vm274_vm0, %v263_v27  ;;  %v639_v49 = vmax.f32 %v607_v42, 0.0 }
  0xd1   : > { %v935_v44 = vpack.c.bf16 %v704_v41, %v703_v39 }
  0xd3   : > { %1038 = vmatmul.bf16.gmra.mxu3 %v935_v44 }
  0xd4   : > { %v415_v45 = vpop.f32.mrf.mxu0  ;;  %v525_v48 = vpop.f32.mrf.mxu1 }
  0xd5   : > { %v608_v47 = vadd.f32 %v2855_v33, %v415_v45  ;;  %v673_v52 = vadd.f32 %v2872_v43, %v525_v48  ;;  %v2959_v45 = vld [vmem:[%s3570_s3 + $0xf8] sm:$0xff] }
  0xd6   : > { %1377 = vmatpush.bf16.msra.mxu1 %v2959_v45  ;;  %1459 = vmatpush.bf16.msrb.mxu3 %v2959_v45 }
  0xd7   : > { %v640_v50 = vmax.f32 %v608_v47, 0.0  ;;  %2150 = vmatmul.msk.f32.gmra.mxu0 %vm274_vm0, %v265_v46  ;;  %2181 = vmatmul.msk.f32.gmra.mxu1 %vm274_vm0, %v264_v37  ;;  %v705_v56 = vmax.f32 %v673_v52, 0.0 }
  0xd9   : > { %v733_v51 = vpack.c.bf16 %v640_v50, %v639_v49 }
  0xdb   : > { %839 = vmatmul.bf16.gmra.mxu2 %v733_v51 }
  0xdc   : > { %v418_v53 = vpop.f32.mrf.mxu0  ;;  %v528_v55 = vpop.f32.mrf.mxu1 }
  0xdd   : > { %v674_v57 = vadd.f32 %v2872_v43, %v528_v55  ;;  %v609_v59 = vadd.f32 %v2855_v33, %v418_v53  ;;  %v2631_v53 = vld [vmem:[%s3570_s3 + $0xb8] sm:$0xff] }
  0xde   : > { %1313 = vmatpush.bf16.msrb.mxu0 %v2631_v53 }
  0xdf   : > { %2151 = vmatmul.msk.f32.gmra.mxu0 %vm274_vm0, %v266_v54  ;;  %v706_v58 = vmax.f32 %v674_v57, 0.0  ;;  %2182 = vmatmul.msk.f32.gmra.mxu1 %vm274_vm0, %v265_v46  ;;  %v641_v1 = vmax.f32 %v609_v59, 0.0 }
  0xe1   : > { %v936_v60 = vpack.c.bf16 %v706_v58, %v705_v56 }
  0xe3   : > { %1043 = vmatmul.bf16.gmra.mxu3 %v936_v60 }
  0xe4   : > { %v421_v61 = vpop.f32.mrf.mxu0  ;;  %v531_v0 = vpop.f32.mrf.mxu1 }
  0xe5   : > { %v610_v63 = vadd.f32 %v2855_v33, %v421_v61  ;;  %v675_v5 = vadd.f32 %v2872_v43, %v531_v0 }
  0xe7   : > { %v642_v3 = vmax.f32 %v610_v63, 0.0  ;;  %2152 = vmatmul.msk.f32.gmra.mxu0 %vm274_vm0, %v267_v62  ;;  %2183 = vmatmul.msk.f32.gmra.mxu1 %vm274_vm0, %v266_v54  ;;  %v707_v9 = vmax.f32 %v675_v5, 0.0 }
  0xe9   : > { %v734_v4 = vpack.c.bf16 %v642_v3, %v641_v1 }
  0xeb   : > { %844 = vmatmul.bf16.gmra.mxu2 %v734_v4 }
  0xec   : > { %v424_v6 = vpop.f32.mrf.mxu0  ;;  %v534_v8 = vpop.f32.mrf.mxu1 }
  0xed   : > { %v676_v10 = vadd.f32 %v2872_v43, %v534_v8  ;;  %v611_v12 = vadd.f32 %v2855_v33, %v424_v6 }
  0xef   : > { %2153 = vmatmul.msk.f32.gmra.mxu0 %vm274_vm0, %v268_v7  ;;  %v708_v11 = vmax.f32 %v676_v10, 0.0  ;;  %2184 = vmatmul.msk.f32.gmra.mxu1 %vm274_vm0, %v267_v62  ;;  %v643_v18 = vmax.f32 %v611_v12, 0.0 }
  0xf1   : > { %v937_v13 = vpack.c.bf16 %v708_v11, %v707_v9 }
  0xf3   : > { %1048 = vmatmul.bf16.gmra.mxu3 %v937_v13 }
  0xf4   : > { %v427_v14 = vpop.f32.mrf.mxu0  ;;  %v537_v17 = vpop.f32.mrf.mxu1 }
  0xf5   : > { %v612_v16 = vadd.f32 %v2855_v33, %v427_v14  ;;  %v677_v21 = vadd.f32 %v2872_v43, %v537_v17  ;;  %v2978_v17 = vld [vmem:[%s3570_s3 + $0xf0] sm:$0xff] }
  0xf6   : > { %1378 = vmatpush.bf16.msra.mxu1 %v2978_v17  ;;  %1460 = vmatpush.bf16.msrb.mxu3 %v2978_v17 }
  0xf7   : > { %v644_v19 = vmax.f32 %v612_v16, 0.0  ;;  %2154 = vmatmul.msk.f32.gmra.mxu0 %vm274_vm0, %v269_v15  ;;  %2185 = vmatmul.msk.f32.gmra.mxu1 %vm274_vm0, %v268_v7  ;;  %v709_v25 = vmax.f32 %v677_v21, 0.0 }
  0xf9   : > { %v735_v20 = vpack.c.bf16 %v644_v19, %v643_v18 }
  0xfb   : > { %849 = vmatmul.bf16.gmra.mxu2 %v735_v20 }
  0xfc   : > { %v430_v22 = vpop.f32.mrf.mxu0  ;;  %v540_v24 = vpop.f32.mrf.mxu1 }
  0xfd   : > { %v678_v26 = vadd.f32 %v2872_v43, %v540_v24  ;;  %v613_v28 = vadd.f32 %v2855_v33, %v430_v22 }
  0xff   : > { %2155 = vmatmul.msk.f32.gmra.mxu0 %vm274_vm0, %v270_v23  ;;  %v710_v27 = vmax.f32 %v678_v26, 0.0  ;;  %2186 = vmatmul.msk.f32.gmra.mxu1 %vm274_vm0, %v269_v15  ;;  %v645_v35 = vmax.f32 %v613_v28, 0.0  ;;  %v2990_v26 = vld [vmem:[%s3571_s4 + $0x2] ss:$0 sm:$0xff] }
 0x101   : > { %v938_v29 = vpack.c.bf16 %v710_v27, %v709_v25 }
 0x103   : > { %1053 = vmatmul.bf16.gmra.mxu3 %v938_v29  ;;  %v2630_v29 = vld [vmem:[%s3570_s3 + $0xb0] sm:$0xff] }
 0x104   : > { %v433_v30 = vpop.f32.mrf.mxu0  ;;  %v543_v34 = vpop.f32.mrf.mxu1  ;;  %1314 = vmatpush.bf16.msrb.mxu0 %v2630_v29 }
 0x105   : > { %v614_v31 = vadd.f32 %v2855_v33, %v433_v30  ;;  %v679_v38 = vadd.f32 %v2872_v43, %v543_v34 }
 0x107   : > { %v646_v36 = vmax.f32 %v614_v31, 0.0  ;;  %2187 = vmatmul.msk.f32.gmra.mxu1 %vm274_vm0, %v270_v23  ;;  %v711_v41 = vmax.f32 %v679_v38, 0.0 }
 0x109   : > { %v736_v37 = vpack.c.bf16 %v646_v36, %v645_v35 }
 0x10b   : > { %854 = vmatmul.bf16.gmra.mxu2 %v736_v37 }
 0x10c   : > { %v436_v39 = vpop.f32.mrf.mxu0  ;;  %v546_v40 = vpop.f32.mrf.mxu1 }
 0x10d   : > { %v680_v42 = vadd.f32 %v2872_v43, %v546_v40  ;;  %v615_v46 = vadd.f32 %v2855_v33, %v436_v39 }
 0x10f   : > { %v712_v44 = vmax.f32 %v680_v42, 0.0  ;;  %2188 = vmatmul.msk.f32.gmra.mxu1 %vm274_vm0, %v2764_v2  ;;  %v647_v51 = vmax.f32 %v615_v46, 0.0 }
 0x111   : > { %v939_v47 = vpack.c.bf16 %v712_v44, %v711_v41 }
 0x113   : > { %1058 = vmatmul.bf16.gmra.mxu3 %v939_v47  ;;  %v3007_v47 = vld [vmem:[%s3571_s4 + $0x3] ss:$0 sm:$0xff] }
 0x114   : > { %v439_v48 = vpop.f32.mrf.mxu0  ;;  %v549_v50 = vpop.f32.mrf.mxu1 }
 0x115   : > { %v616_v49 = vadd.f32 %v2855_v33, %v439_v48  ;;  %v681_v54 = vadd.f32 %v2872_v43, %v549_v50 }
 0x117   : > { %v648_v52 = vmax.f32 %v616_v49, 0.0  ;;  %v713_v58 = vmax.f32 %v681_v54, 0.0 }
 0x119   : > { %v737_v2 = vpack.c.bf16 %v648_v52, %v647_v51 }
 0x11b   : > { %859 = vmatmul.bf16.gmra.mxu2 %v737_v2 }
 0x11c   : > { %v442_v55 = vpop.f32.mrf.mxu0  ;;  %v552_v57 = vpop.f32.mrf.mxu1 }
 0x11d   : > { %v682_v59 = vadd.f32 %v2872_v43, %v552_v57  ;;  %v617_v61 = vadd.f32 %v2855_v33, %v442_v55 }
 0x11e   : > { %v820_v56 = vpop.f32.mrf.mxu2 }
 0x11f   : > { %v714_v60 = vmax.f32 %v682_v59, 0.0  ;;  %v649_v4 = vmax.f32 %v617_v61, 0.0  ;;  %v821_v31 = vadd.f32 %v2990_v26, %v820_v56 }
 0x121   : > { %v940_v62 = vpack.c.bf16 %v714_v60, %v713_v58  ;;  %v900_v40 = vmax.f32 %v821_v31, 0.0 }
 0x123   : > { %1063 = vmatmul.bf16.gmra.mxu3 %v940_v62 }
 0x124   : > { %v445_v63 = vpop.f32.mrf.mxu0  ;;  %v555_v3 = vpop.f32.mrf.mxu1 }
 0x125   : > { %v618_v0 = vadd.f32 %v2855_v33, %v445_v63  ;;  %v683_v8 = vadd.f32 %v2872_v43, %v555_v3 }
 0x126   : > { %v822_v1 = vpop.f32.mrf.mxu2  ;;  %v1024_v6 = vpop.f32.mrf.mxu3 }
 0x127   : > { %v650_v5 = vmax.f32 %v618_v0, 0.0  ;;  %v715_v12 = vmax.f32 %v683_v8, 0.0  ;;  %v823_v50 = vadd.f32 %v2990_v26, %v822_v1  ;;  %v1025_v56 = vadd.f32 %v3007_v47, %v1024_v6 }
 0x129   : > { %v738_v7 = vpack.c.bf16 %v650_v5, %v649_v4  ;;  %v901_v58 = vmax.f32 %v823_v50, 0.0  ;;  %v1104_v62 = vmax.f32 %v1025_v56, 0.0 }
 0x12b   : > { %864 = vmatmul.bf16.gmra.mxu2 %v738_v7 }
 0x12c   : > { %v448_v9 = vpop.f32.mrf.mxu0  ;;  %v558_v11 = vpop.f32.mrf.mxu1 }
 0x12d   : > { %v684_v13 = vadd.f32 %v2872_v43, %v558_v11  ;;  %v619_v16 = vadd.f32 %v2855_v33, %v448_v9 }
 0x12e   : > { %v825_v10 = vpop.f32.mrf.mxu2  ;;  %v1026_v14 = vpop.f32.mrf.mxu3 }
 0x12f   : > { %v716_v15 = vmax.f32 %v684_v13, 0.0  ;;  %v651_v23 = vmax.f32 %v619_v16, 0.0  ;;  %v826_v3 = vadd.f32 %v2990_v26, %v825_v10  ;;  %v1027_v7 = vadd.f32 %v3007_v47, %v1026_v14  ;;  %v3030_v14 = vld [vmem:[%s3570_s3 + $0xe8] sm:$0xff] }
 0x130   : > { %1379 = vmatpush.bf16.msra.mxu1 %v3030_v14  ;;  %1461 = vmatpush.bf16.msrb.mxu3 %v3030_v14 }
 0x131   : > { %v941_v18 = vpack.c.bf16 %v716_v15, %v715_v12  ;;  %v902_v15 = vmax.f32 %v826_v3, 0.0 }
 0x133   : > { %1068 = vmatmul.bf16.gmra.mxu3 %v941_v18 }
 0x134   : > { %v451_v19 = vpop.f32.mrf.mxu0  ;;  %v561_v22 = vpop.f32.mrf.mxu1 }
 0x135   : > { %v620_v20 = vadd.f32 %v2855_v33, %v451_v19  ;;  %v685_v28 = vadd.f32 %v2872_v43, %v561_v22  ;;  %v1105_v19 = vmax.f32 %v1027_v7, 0.0 }
 0x136   : > { %v2982_v21 = vpop.f32.mrf.mxu2  ;;  %v2985_v25 = vpop.f32.mrf.mxu3 }
 0x137   : > { %v652_v24 = vmax.f32 %v620_v20, 0.0  ;;  %v717_v37 = vmax.f32 %v685_v28, 0.0  ;;  %v1030_v31 = vadd.f32 %v3007_v47, %v2985_v25 }
 0x139   : > { %v739_v27 = vpack.c.bf16 %v652_v24, %v651_v23  ;;  %v1106_v25 = vmax.f32 %v1030_v31, 0.0 }
 0x13b   : > { %869 = vmatmul.bf16.gmra.mxu2 %v739_v27  ;;  %v828_v27 = vadd.f32 %v2990_v26, %v2982_v21 }
 0x13c   : > { %v454_v30 = vpop.f32.mrf.mxu0  ;;  %v564_v35 = vpop.f32.mrf.mxu1 }
 0x13d   : > { %v686_v38 = vadd.f32 %v2872_v43, %v564_v35  ;;  %v621_v44 = vadd.f32 %v2855_v33, %v454_v30 }
 0x13e   : > { %v830_v34 = vpop.f32.mrf.mxu2  ;;  %v2999_v39 = vpop.f32.mrf.mxu3 }
 0x13f   : > { %v831_v36 = vadd.f32 %v2990_v26, %v830_v34  ;;  %v718_v42 = vmax.f32 %v686_v38, 0.0  ;;  %v653_v53 = vmax.f32 %v621_v44, 0.0  ;;  %v2629_v44 = vld [vmem:[%s3570_s3 + $0xa8] sm:$0xff] }
 0x140   : > { %1315 = vmatpush.bf16.msrb.mxu0 %v2629_v44 }
 0x141   : > { %v904_v41 = vmax.f32 %v831_v36, 0.0  ;;  %v942_v48 = vpack.c.bf16 %v718_v42, %v717_v37 }
 0x143   : > { %v3002_v46 = vmax.f32 %v900_v40, %v904_v41  ;;  %1073 = vmatmul.bf16.gmra.mxu3 %v942_v48  ;;  %v903_v40 = vmax.f32 %v828_v27, 0.0 }
 0x144   : > { %v457_v49 = vpop.f32.mrf.mxu0  ;;  %v567_v2 = vpop.f32.mrf.mxu1 }
 0x145   : > { %v622_v51 = vadd.f32 %v2855_v33, %v457_v49  ;;  %v687_v63 = vadd.f32 %v2872_v43, %v567_v2 }
 0x146   : > { %v832_v52 = vpop.f32.mrf.mxu2  ;;  %v1034_v57 = vpop.f32.mrf.mxu3 }
 0x147   : > { %v654_v54 = vmax.f32 %v622_v51, 0.0  ;;  %v833_v55 = vadd.f32 %v2990_v26, %v832_v52  ;;  %v1035_v0 = vadd.f32 %v3007_v47, %v1034_v57  ;;  %v719_v9 = vmax.f32 %v687_v63, 0.0 }
 0x149   : > { %v905_v59 = vmax.f32 %v833_v55, 0.0  ;;  %v740_v60 = vpack.c.bf16 %v654_v54, %v653_v53  ;;  %v1108_v4 = vmax.f32 %v1035_v0, 0.0  ;;  %v1032_v53 = vadd.f32 %v3007_v47, %v2999_v39 }
 0x14b   : > { %v3013_v61 = vmax.f32 %v901_v58, %v905_v59  ;;  %874 = vmatmul.bf16.gmra.mxu2 %v740_v60  ;;  %v3020_v11 = vmax.f32 %v1104_v62, %v1108_v4  ;;  %v1107_v63 = vmax.f32 %v1032_v53, 0.0 }
 0x14c   : > { %v460_v1 = vpop.f32.mrf.mxu0  ;;  %v570_v6 = vpop.f32.mrf.mxu1 }
 0x14d   : > { %v688_v12 = vadd.f32 %v2872_v43, %v570_v6  ;;  %v623_v20 = vadd.f32 %v2855_v33, %v460_v1 }
 0x14e   : > { %v835_v5 = vpop.f32.mrf.mxu2  ;;  %v1036_v13 = vpop.f32.mrf.mxu3 }
 0x14f   : > { %v836_v8 = vadd.f32 %v2990_v26, %v835_v5  ;;  %v720_v18 = vmax.f32 %v688_v12, 0.0  ;;  %v1037_v22 = vadd.f32 %v3007_v47, %v1036_v13  ;;  %v655_v35 = vmax.f32 %v623_v20, 0.0 }
 0x151   : > { %v906_v16 = vmax.f32 %v836_v8, 0.0  ;;  %v943_v23 = vpack.c.bf16 %v720_v18, %v719_v9  ;;  %v1109_v29 = vmax.f32 %v1037_v22, 0.0 }
 0x153   : > { %v3024_v10 = vmax.f32 %v902_v15, %v906_v16  ;;  %1078 = vmatmul.bf16.gmra.mxu3 %v943_v23  ;;  %v3040_v38 = vmax.f32 %v1105_v19, %v1109_v29 }
 0x154   : > { %v463_v24 = vpop.f32.mrf.mxu0  ;;  %v573_v34 = vpop.f32.mrf.mxu1 }
 0x155   : > { %v624_v28 = vadd.f32 %v2855_v33, %v463_v24  ;;  %v689_v49 = vadd.f32 %v2872_v43, %v573_v34 }
 0x156   : > { %v837_v30 = vpop.f32.mrf.mxu2  ;;  %v1039_v21 = vpop.f32.mrf.mxu3 }
 0x157   : > { %v656_v36 = vmax.f32 %v624_v28, 0.0  ;;  %v838_v37 = vadd.f32 %v2990_v26, %v837_v30  ;;  %v1040_v50 = vadd.f32 %v3007_v47, %v1039_v21  ;;  %v721_v56 = vmax.f32 %v689_v49, 0.0  ;;  %v3075_v21 = vld [vmem:[%s3570_s3 + $0xe0] sm:$0xff] }
 0x158   : > { %1380 = vmatpush.bf16.msra.mxu1 %v3075_v21  ;;  %1462 = vmatpush.bf16.msrb.mxu3 %v3075_v21 }
 0x159   : > { %v741_v41 = vpack.c.bf16 %v656_v36, %v655_v35  ;;  %v907_v42 = vmax.f32 %v838_v37, 0.0  ;;  %v1110_v52 = vmax.f32 %v1040_v50, 0.0 }
 0x15b   : > { %v3045_v48 = vmax.f32 %v903_v40, %v907_v42  ;;  %879 = vmatmul.bf16.gmra.mxu2 %v741_v41  ;;  %v3052_v57 = vmax.f32 %v1106_v25, %v1110_v52 }
 0x15c   : > { %v466_v51 = vpop.f32.mrf.mxu0  ;;  %v576_v54 = vpop.f32.mrf.mxu1 }
 0x15d   : > { %v690_v58 = vadd.f32 %v2872_v43, %v576_v54  ;;  %v625_v0 = vadd.f32 %v2855_v33, %v466_v51  ;;  %v630_v54 = vadd.f32 %v2855_v33, %v2850_v32 }
 0x15e   : > { %v840_v2 = vpop.f32.mrf.mxu2  ;;  %v1041_v59 = vpop.f32.mrf.mxu3 }
 0x15f   : > { %v841_v55 = vadd.f32 %v2990_v26, %v840_v2  ;;  %v722_v62 = vmax.f32 %v690_v58, 0.0  ;;  %v1042_v4 = vadd.f32 %v3007_v47, %v1041_v59  ;;  %v657_v9 = vmax.f32 %v625_v0, 0.0 }
 0x161   : > { %v908_v60 = vmax.f32 %v841_v55, 0.0  ;;  %v944_v3 = vpack.c.bf16 %v722_v62, %v721_v56  ;;  %v1111_v7 = vmax.f32 %v1042_v4, 0.0 }
 0x163   : > { %v1140_v1 = vmax.f32 %v3002_v46, %v908_v60  ;;  %1083 = vmatmul.bf16.gmra.mxu3 %v944_v3  ;;  %v3061_v13 = vmax.f32 %v1107_v63, %v1111_v7 }
 0x164   : > { %v469_v39 = vpop.f32.mrf.mxu0  ;;  %v579_v8 = vpop.f32.mrf.mxu1 }
 0x165   : > { %v626_v5 = vadd.f32 %v2855_v33, %v469_v39  ;;  %v691_v46 = vadd.f32 %v2872_v43, %v579_v8  ;;  %v662_v39 = vmax.f32 %v630_v54, 0.0 }
 0x166   : > { %v3059_v6 = vpop.f32.mrf.mxu2  ;;  %v1044_v15 = vpop.f32.mrf.mxu3 }
 0x167   : > { %v658_v12 = vmax.f32 %v626_v5, 0.0  ;;  %v1045_v18 = vadd.f32 %v3007_v47, %v1044_v15  ;;  %v723_v27 = vmax.f32 %v691_v46, 0.0 }
 0x169   : > { %v742_v16 = vpack.c.bf16 %v658_v12, %v657_v9  ;;  %v1112_v20 = vmax.f32 %v1045_v18, 0.0 }
 0x16b   : > { %884 = vmatmul.bf16.gmra.mxu2 %v742_v16  ;;  %v1177_v28 = vmax.f32 %v3020_v11, %v1112_v20  ;;  %v2628_v11 = vld [vmem:[%s3570_s3 + $0xa0] sm:$0xff] }
 0x16c   : > { %v472_v19 = vpop.f32.mrf.mxu0  ;;  %v582_v23 = vpop.f32.mrf.mxu1  ;;  %1316 = vmatpush.bf16.msrb.mxu0 %v2628_v11 }
 0x16d   : > { %v692_v29 = vadd.f32 %v2872_v43, %v582_v23  ;;  %v627_v35 = vadd.f32 %v2855_v33, %v472_v19 }
 0x16e   : > { %v845_v22 = vpop.f32.mrf.mxu2  ;;  %v3068_v30 = vpop.f32.mrf.mxu3 }
 0x16f   : > { %v846_v24 = vadd.f32 %v2990_v26, %v845_v22  ;;  %v724_v34 = vmax.f32 %v692_v29, 0.0  ;;  %v659_v44 = vmax.f32 %v627_v35, 0.0  ;;  %v3109_v35 = vld [vmem:[%s3570_s3 + $0xd8] sm:$0xff] }
 0x170   : > { %1381 = vmatpush.bf16.msra.mxu1 %v3109_v35  ;;  %1463 = vmatpush.bf16.msrb.mxu3 %v3109_v35 }
 0x171   : > { %v910_v31 = vmax.f32 %v846_v24, 0.0  ;;  %v945_v37 = vpack.c.bf16 %v724_v34, %v723_v27  ;;  %v2627_v34 = vld [vmem:[%s3570_s3 + $0x98] sm:$0xff] }
 0x172   : > { %1317 = vmatpush.bf16.msrb.mxu0 %v2627_v34 }
 0x173   : > { %v1142_v36 = vmax.f32 %v3024_v10, %v910_v31  ;;  %1088 = vmatmul.bf16.gmra.mxu3 %v945_v37  ;;  %v3117_v37 = vld [vmem:[%s3570_s3 + $0x138] sm:$0xff] }
 0x174   : > { %v475_v40 = vpop.f32.mrf.mxu0  ;;  %v585_v10 = vpop.f32.mrf.mxu1  ;;  %1443 = vmatpush.bf16.msrb.mxu2 %v3117_v37 }
 0x175   : > { %v628_v41 = vadd.f32 %v2855_v33, %v475_v40  ;;  %v693_v51 = vadd.f32 %v2872_v43, %v585_v10 }
 0x176   : > { %v3082_v42 = vpop.f32.mrf.mxu2  ;;  %v1049_v49 = vpop.f32.mrf.mxu3 }
 0x177   : > { %v660_v25 = vmax.f32 %v628_v41, 0.0  ;;  %v1050_v52 = vadd.f32 %v3007_v47, %v1049_v49  ;;  %v725_v56 = vmax.f32 %v693_v51, 0.0  ;;  %v848_v54 = vadd.f32 %v2990_v26, %v3082_v42 }
 0x179   : > { %v743_v50 = vpack.c.bf16 %v660_v25, %v659_v44  ;;  %v1114_v53 = vmax.f32 %v1050_v52, 0.0 }
 0x17b   : > { %889 = vmatmul.bf16.gmra.mxu2 %v743_v50  ;;  %v1179_v62 = vmax.f32 %v3052_v57, %v1114_v53 }
 0x17c   : > { %v478_v2 = vpop.f32.mrf.mxu0  ;;  %v588_v58 = vpop.f32.mrf.mxu1 }
 0x17d   : > { %v629_v60 = vadd.f32 %v2855_v33, %v478_v2  ;;  %v694_v63 = vadd.f32 %v2872_v43, %v588_v58 }
 0x17e   : > { %v850_v55 = vpop.f32.mrf.mxu2  ;;  %v3093_v0 = vpop.f32.mrf.mxu3 }
 0x17f   : > { %v851_v59 = vadd.f32 %v2990_v26, %v850_v55  ;;  %v726_v4 = vmax.f32 %v694_v63, 0.0  ;;  %v661_v7 = vmax.f32 %v629_v60, 0.0 }
 0x181   : > { %v912_v3 = vmax.f32 %v851_v59, 0.0  ;;  %v946_v8 = vpack.c.bf16 %v726_v4, %v725_v56  ;;  %v744_v12 = vpack.c.bf16 %v662_v39, %v661_v7  ;;  %v3134_v4 = vld [vmem:[%s3570_s3 + $0xd0] sm:$0xff]  ;;  %v1052_v7 = vadd.f32 %v3007_v47, %v3093_v0 }
 0x182   : > { %1382 = vmatpush.bf16.msra.mxu1 %v3134_v4  ;;  %1464 = vmatpush.bf16.msrb.mxu3 %v3134_v4 }
 0x183   : > { %v1144_v5 = vmax.f32 %v1140_v1, %v912_v3  ;;  %1093 = vmatmul.bf16.gmra.mxu3 %v946_v8  ;;  %v2626_v3 = vld [vmem:[%s3570_s3 + $0x90] sm:$0xff] }
 0x184   : > { %v591_v9 = vpop.f32.mrf.mxu1  ;;  %1318 = vmatpush.bf16.msrb.mxu0 %v2626_v3 }
 0x185   : > { %v695_v33 = vadd.f32 %v2872_v43, %v591_v9 }
 0x186   : > { %v3095_v32 = vpop.f32.mrf.mxu2  ;;  %v1054_v15 = vpop.f32.mrf.mxu3 }
 0x187   : > { %v1055_v57 = vadd.f32 %v3007_v47, %v1054_v15  ;;  %v727_v20 = vmax.f32 %v695_v33, 0.0  ;;  %v1115_v33 = vmax.f32 %v1052_v7, 0.0 }
 0x189   : > { %v1116_v16 = vmax.f32 %v1055_v57, 0.0 }
 0x18b   : > { %894 = vmatmul.bf16.gmra.mxu2 %v744_v12  ;;  %v1181_v1 = vmax.f32 %v1177_v28, %v1116_v16 }
 0x18c   : > { %v594_v18 = vpop.f32.mrf.mxu1 }
 0x18d   : > { %v696_v22 = vadd.f32 %v2872_v43, %v594_v18  ;;  %v3149_v18 = vld [vmem:[%s3570_s3 + $0x130] sm:$0xff] }
 0x18e   : > { %v855_v46 = vpop.f32.mrf.mxu2  ;;  %v3101_v23 = vpop.f32.mrf.mxu3  ;;  %1444 = vmatpush.bf16.msrb.mxu2 %v3149_v18 }
 0x18f   : > { %v856_v19 = vadd.f32 %v2990_v26, %v855_v46  ;;  %v728_v27 = vmax.f32 %v696_v22, 0.0 }
 0x191   : > { %v914_v24 = vmax.f32 %v856_v19, 0.0  ;;  %v947_v31 = vpack.c.bf16 %v728_v27, %v727_v20  ;;  %v853_v19 = vadd.f32 %v2990_v26, %v3095_v32 }
 0x193   : > { %v1146_v29 = vmax.f32 %v1142_v36, %v914_v24  ;;  %1098 = vmatmul.bf16.gmra.mxu3 %v947_v31 }
 0x196   : > { %v857_v28 = vpop.f32.mrf.mxu2  ;;  %v1059_v43 = vpop.f32.mrf.mxu3 }
 0x197   : > { %v1060_v36 = vadd.f32 %v3007_v47, %v1059_v43  ;;  %v858_v59 = vadd.f32 %v2990_v26, %v857_v28  ;;  %v913_v43 = vmax.f32 %v853_v19, 0.0 }
 0x199   : > { %v1118_v11 = vmax.f32 %v1060_v36, 0.0  ;;  %v915_v42 = vmax.f32 %v858_v59, 0.0 }
 0x19b   : > { %v1183_v10 = vmax.f32 %v1179_v62, %v1118_v11  ;;  %v911_v62 = vmax.f32 %v848_v54, 0.0 }
 0x19e   : > { %v860_v40 = vpop.f32.mrf.mxu2  ;;  %v1061_v44 = vpop.f32.mrf.mxu3 }
 0x19f   : > { %v861_v41 = vadd.f32 %v2990_v26, %v860_v40  ;;  %v1062_v16 = vadd.f32 %v3007_v47, %v1061_v44 }
 0x1a1   : > { %v916_v25 = vmax.f32 %v861_v41, 0.0  ;;  %v1119_v24 = vmax.f32 %v1062_v16, 0.0 }
 0x1a3   : > { %v1148_v49 = vmax.f32 %v1144_v5, %v916_v25  ;;  %v1143_v5 = vmax.f32 %v3045_v48, %v911_v62  ;;  %v843_v48 = vadd.f32 %v2990_v26, %v3059_v6  ;;  %v1047_v6 = vadd.f32 %v3007_v47, %v3068_v30 }
 0x1a5   : > { %v1147_v12 = vmax.f32 %v1143_v5, %v915_v42  ;;  %v909_v31 = vmax.f32 %v843_v48, 0.0  ;;  %v1113_v44 = vmax.f32 %v1047_v6, 0.0 }
 0x1a6   : > { %v862_v50 = vpop.f32.mrf.mxu2  ;;  %v1064_v51 = vpop.f32.mrf.mxu3 }
 0x1a7   : > { %v1065_v52 = vadd.f32 %v3007_v47, %v1064_v51  ;;  %v863_v34 = vadd.f32 %v2990_v26, %v862_v50  ;;  %v1057_v50 = vadd.f32 %v3007_v47, %v3101_v23 }
 0x1a9   : > { %v1120_v2 = vmax.f32 %v1065_v52, 0.0  ;;  %v917_v40 = vmax.f32 %v863_v34, 0.0  ;;  %v1117_v54 = vmax.f32 %v1057_v50, 0.0 }
 0x1ab   : > { %v3125_v56 = vmax.f32 %v1181_v1, %v1120_v2  ;;  %v1180_v1 = vmax.f32 %v3061_v13, %v1115_v33  ;;  %v1141_v13 = vmax.f32 %v3013_v61, %v909_v31 }
 0x1ad   : > { %v1184_v11 = vmax.f32 %v1180_v1, %v1119_v24  ;;  %v1145_v25 = vmax.f32 %v1141_v13, %v913_v43  ;;  %v3208_v13 = vld [vmem:[%s3570_s3 + $0xc0] sm:$0xff] }
 0x1ae   : > { %v865_v53 = vpop.f32.mrf.mxu2  ;;  %v1066_v58 = vpop.f32.mrf.mxu3 }
 0x1af   : > { %v866_v55 = vadd.f32 %v2990_v26, %v865_v53  ;;  %v1149_v2 = vmax.f32 %v1145_v25, %v917_v40  ;;  %v1178_v53 = vmax.f32 %v3040_v38, %v1113_v44  ;;  %v1067_v61 = vadd.f32 %v3007_v47, %v1066_v58  ;;  %v2625_v58 = vld [vmem:[%s3570_s3 + $0x88] sm:$0xff] }
 0x1b0   : > { %1319 = vmatpush.bf16.msrb.mxu0 %v2625_v58 }
 0x1b1   : > { %v918_v60 = vmax.f32 %v866_v55, 0.0  ;;  %v1182_v3 = vmax.f32 %v1178_v53, %v1117_v54  ;;  %v1121_v42 = vmax.f32 %v1067_v61, 0.0  ;;  %v3238_v54 = vld [vmem:[%s3570_s3 + $0x120] sm:$0xff] }
 0x1b3   : > { %v1150_v63 = vmax.f32 %v1146_v29, %v918_v60  ;;  %v1186_v38 = vmax.f32 %v1182_v3, %v1121_v42 }
 0x1b6   : > { %v867_v39 = vpop.f32.mrf.mxu2  ;;  %v1069_v9 = vpop.f32.mrf.mxu3 }
 0x1b7   : > { %v868_v8 = vadd.f32 %v2990_v26, %v867_v39  ;;  %v1070_v46 = vadd.f32 %v3007_v47, %v1069_v9 }
 0x1b9   : > { %v919_v15 = vmax.f32 %v868_v8, 0.0  ;;  %v1122_v0 = vmax.f32 %v1070_v46, 0.0  ;;  %v3194_v46 = vld [vmem:[%s3570_s3 + $0x128] sm:$0xff] }
 0x1ba   : > { %1445 = vmatpush.bf16.msrb.mxu2 %v3194_v46 }
 0x1bb   : > { %v3142_v57 = vmax.f32 %v1147_v12, %v919_v15  ;;  %v1187_v27 = vmax.f32 %v1183_v10, %v1122_v0  ;;  %v3184_v12 = vld [vmem:[%s3570_s3 + $0xc8] sm:$0xff] }
 0x1bc   : > { %1383 = vmatpush.bf16.msra.mxu1 %v3184_v12  ;;  %1465 = vmatpush.bf16.msrb.mxu3 %v3184_v12 }
 0x1be   : > { %v870_v20 = vpop.f32.mrf.mxu2  ;;  %v1071_v29 = vpop.f32.mrf.mxu3  ;;  %1446 = vmatpush.bf16.msrb.mxu2 %v3238_v54 }
 0x1bf   : > { %v871_v22 = vadd.f32 %v2990_v26, %v870_v20  ;;  %v1072_v32 = vadd.f32 %v3007_v47, %v1071_v29 }
 0x1c0   : > { %1384 = vmatpush.bf16.msra.mxu1 %v3208_v13  ;;  %1466 = vmatpush.bf16.msrb.mxu3 %v3208_v13 }
 0x1c1   : > { %v920_v28 = vmax.f32 %v871_v22, 0.0  ;;  %v1123_v41 = vmax.f32 %v1072_v32, 0.0 }
 0x1c3   : > { %v3161_v36 = vmax.f32 %v1148_v49, %v920_v28  ;;  %v1188_v52 = vmax.f32 %v1184_v11, %v1123_v41 }
 0x1c4   : > { %1493 = vmatpush.bf16.msrb.mxu1 %v2959_v45  ;;  %1527 = vmatpush.bf16.msra.mxu3 %v2959_v45 }
 0x1c6   : > { %v872_v10 = vpop.f32.mrf.mxu2  ;;  %v1074_v30 = vpop.f32.mrf.mxu3 }
 0x1c7   : > { %v873_v51 = vadd.f32 %v2990_v26, %v872_v10  ;;  %v1075_v59 = vadd.f32 %v3007_v47, %v1074_v30 }
 0x1c8   : > { %1494 = vmatpush.bf16.msrb.mxu1 %v2978_v17  ;;  %1528 = vmatpush.bf16.msra.mxu3 %v2978_v17 }
 0x1c9   : > { %v921_v49 = vmax.f32 %v873_v51, 0.0  ;;  %v1124_v60 = vmax.f32 %v1075_v59, 0.0  ;;  %v3241_v59 = vld [vmem:[%s235_s16] sm:$0xff] }
 0x1cb   : > { %v3169_v55 = vmax.f32 %v1149_v2, %v921_v49  ;;  %v1189_v39 = vmax.f32 %v3125_v56, %v1124_v60 }
 0x1cc   : > { %1495 = vmatpush.bf16.msrb.mxu1 %v3030_v14  ;;  %1529 = vmatpush.bf16.msra.mxu3 %v3030_v14 }
 0x1ce   : > { %v875_v62 = vpop.f32.mrf.mxu2  ;;  %v1076_v5 = vpop.f32.mrf.mxu3 }
 0x1cf   : > { %v876_v23 = vadd.f32 %v2990_v26, %v875_v62  ;;  %v1077_v9 = vadd.f32 %v3007_v47, %v1076_v5  ;;  %v1327_v62 = vpack.c.bf16 %v3241_v59, %v3241_v59 }
 0x1d0   : > { %1496 = vmatpush.bf16.msrb.mxu1 %v3075_v21  ;;  %1530 = vmatpush.bf16.msra.mxu3 %v3075_v21 }
 0x1d1   : > { %v922_v7 = vmax.f32 %v876_v23, 0.0  ;;  %v1125_v15 = vmax.f32 %v1077_v9, 0.0  ;;  %1385 = vmatmul.bf16.vlgmr.msra.gmra.mxu1 %v1327_v62 }
 0x1d3   : > { %v3175_v8 = vmax.f32 %v1150_v63, %v922_v7  ;;  %v1190_v63 = vmax.f32 %v1186_v38, %v1125_v15 }
 0x1d4   : > { %1531 = vmatpush.bf16.msra.mxu3 %v3109_v35  ;;  %1497 = vmatpush.bf16.msrb.mxu1 %v3109_v35 }
 0x1d6   : > { %v3187_v56 = vpop.f32.mrf.mxu2  ;;  %v1079_v33 = vpop.f32.mrf.mxu3 }
 0x1d7   : > { %v1080_v16 = vadd.f32 %v3007_v47, %v1079_v33 }
 0x1d8   : > { %1532 = vmatpush.bf16.msra.mxu3 %v3134_v4  ;;  %1498 = vmatpush.bf16.msrb.mxu1 %v3134_v4 }
 0x1d9   : > { %v1126_v48 = vmax.f32 %v1080_v16, 0.0 }
 0x1db   : > { %v1191_v19 = vmax.f32 %v1187_v27, %v1126_v48  ;;  %v2624_v27 = vld [vmem:[%s3570_s3 + $0x80] sm:$0xff] }
 0x1dc   : > { %1320 = vmatpush.bf16.msrb.mxu0 %v2624_v27  ;;  %1533 = vmatpush.bf16.msra.mxu3 %v3184_v12  ;;  %v3286_v27 = vld [vmem:[%s3570_s3 + $0x108] sm:$0xff] }
 0x1dd   : > { %1499 = vmatpush.bf16.msrb.mxu1 %v3184_v12 }
 0x1de   : > { %v880_v0 = vpop.f32.mrf.mxu2  ;;  %v1081_v20 = vpop.f32.mrf.mxu3 }
 0x1df   : > { %v1082_v1 = vadd.f32 %v3007_v47, %v1081_v20  ;;  %v881_v50 = vadd.f32 %v2990_v26, %v880_v0 }
 0x1e0   : > { %1477 = vmatpush.bf16.msra.mxu0 %v3117_v37  ;;  %1534 = vmatpush.bf16.msra.mxu3 %v3208_v13 }
 0x1e1   : > { %v1127_v22 = vmax.f32 %v1082_v1, 0.0  ;;  %v924_v2 = vmax.f32 %v881_v50, 0.0  ;;  %1500 = vmatpush.bf16.msrb.mxu1 %v3208_v13 }
 0x1e3   : > { %v1192_v29 = vmax.f32 %v1188_v52, %v1127_v22  ;;  %v1156_v5 = vmax.f32 %v3161_v36, %v924_v2 }
 0x1e4   : > { %1478 = vmatpush.bf16.msra.mxu0 %v3149_v18 }
 0x1e5   : > { %1561 = vmatpush.bf16.msra.mxu1 %v2959_v45 }
 0x1e6   : > { %v882_v24 = vpop.f32.mrf.mxu2  ;;  %v1084_v31 = vpop.f32.mrf.mxu3 }
 0x1e7   : > { %v1085_v34 = vadd.f32 %v3007_v47, %v1084_v31  ;;  %v883_v51 = vadd.f32 %v2990_v26, %v882_v24 }
 0x1e8   : > { %1479 = vmatpush.bf16.msra.mxu0 %v3194_v46 }
 0x1e9   : > { %v1128_v6 = vmax.f32 %v1085_v34, 0.0  ;;  %v925_v49 = vmax.f32 %v883_v51, 0.0  ;;  %1562 = vmatpush.bf16.msra.mxu1 %v2978_v17 }
 0x1eb   : > { %v1193_v11 = vmax.f32 %v1189_v39, %v1128_v6  ;;  %v1157_v7 = vmax.f32 %v3169_v55, %v925_v49  ;;  %v878_v55 = vadd.f32 %v2990_v26, %v3187_v56  ;;  %v3278_v6 = vld [vmem:[%s3570_s3 + $0x110] sm:$0xff] }
 0x1ec   : > { %1480 = vmatpush.bf16.msra.mxu0 %v3238_v54 }
 0x1ed   : > { %v923_v56 = vmax.f32 %v878_v55, 0.0  ;;  %1563 = vmatpush.bf16.msra.mxu1 %v3030_v14 }
 0x1ee   : > { %v3199_v28 = vpop.f32.mrf.mxu2  ;;  %v1086_v43 = vpop.f32.mrf.mxu3 }
 0x1ef   : > { %v1087_v32 = vadd.f32 %v3007_v47, %v1086_v43  ;;  %v886_v1 = vadd.f32 %v2990_v26, %v3199_v28 }
 0x1f1   : > { %v1129_v40 = vmax.f32 %v1087_v32, 0.0  ;;  %v926_v28 = vmax.f32 %v886_v1, 0.0  ;;  %1564 = vmatpush.bf16.msra.mxu1 %v3075_v21 }
 0x1f3   : > { %v3213_v44 = vmax.f32 %v1190_v63, %v1129_v40  ;;  %v1155_v40 = vmax.f32 %v3142_v57, %v923_v56  ;;  %v3300_v57 = vld [vmem:[%s3570_s3 + $0x100] sm:$0xff] }
 0x1f5   : > { %1565 = vmatpush.bf16.msra.mxu1 %v3109_v35 }
 0x1f6   : > { %v887_v41 = vpop.f32.mrf.mxu2  ;;  %v1089_v10 = vpop.f32.mrf.mxu3 }
 0x1f7   : > { %v1090_v53 = vadd.f32 %v3007_v47, %v1089_v10  ;;  %v888_v22 = vadd.f32 %v2990_v26, %v887_v41 }
 0x1f9   : > { %v1130_v42 = vmax.f32 %v1090_v53, 0.0  ;;  %v927_v43 = vmax.f32 %v888_v22, 0.0  ;;  %1566 = vmatpush.bf16.msra.mxu1 %v3134_v4 }
 0x1fb   : > { %v1195_v9 = vmax.f32 %v1191_v19, %v1130_v42  ;;  %v3264_v19 = vld [vmem:[%s3570_s3 + $0x118] sm:$0xff]  ;;  %v1159_v50 = vmax.f32 %v1155_v40, %v927_v43 }
 0x1fc   : > { %1447 = vmatpush.bf16.msrb.mxu2 %v3264_v19  ;;  %1481 = vmatpush.bf16.msra.mxu0 %v3264_v19 }
 0x1fd   : > { %1567 = vmatpush.bf16.msra.mxu1 %v3184_v12 }
 0x1fe   : > { %v890_v25 = vpop.f32.mrf.mxu2  ;;  %v1091_v52 = vpop.f32.mrf.mxu3 }
 0x1ff   : > { %v891_v30 = vadd.f32 %v2990_v26, %v890_v25  ;;  %v1092_v61 = vadd.f32 %v3007_v47, %v1091_v52 }
 0x200   : > { %1448 = vmatpush.bf16.msrb.mxu2 %v3278_v6  ;;  %1482 = vmatpush.bf16.msra.mxu0 %v3278_v6 }
 0x201   : > { %v928_v3 = vmax.f32 %v891_v30, 0.0  ;;  %v1131_v39 = vmax.f32 %v1092_v61, 0.0  ;;  %1568 = vmatpush.bf16.msra.mxu1 %v3208_v13 }
 0x203   : > { %v3251_v58 = vmax.f32 %v1192_v29, %v1131_v39  ;;  %v1160_v33 = vmax.f32 %v1156_v5, %v928_v3 }
 0x204   : > { %1449 = vmatpush.bf16.msrb.mxu2 %v3286_v27  ;;  %1483 = vmatpush.bf16.msra.mxu0 %v3286_v27 }
 0x206   : > { %v892_v60 = vpop.f32.mrf.mxu2  ;;  %v1094_v15 = vpop.f32.mrf.mxu3 }
 0x207   : > { %v893_v23 = vadd.f32 %v2990_v26, %v892_v60  ;;  %v1095_v63 = vadd.f32 %v3007_v47, %v1094_v15 }
 0x208   : > { %1450 = vmatpush.bf16.msrb.mxu2 %v3300_v57  ;;  %1484 = vmatpush.bf16.msra.mxu0 %v3300_v57 }
 0x209   : > { %v929_v38 = vmax.f32 %v893_v23, 0.0  ;;  %v1132_v48 = vmax.f32 %v1095_v63, 0.0 }
 0x20b   : > { %v1161_v16 = vmax.f32 %v1157_v7, %v929_v38  ;;  %v3257_v20 = vmax.f32 %v1193_v11, %v1132_v48 }
 0x20c   : > { %1511 = vmatpush.bf16.msra.mxu2 %v3117_v37 }
 0x20d   : > { %v1164_v36 = vmax.f32 %v1160_v33, %v1161_v16  ;;  %v1261_v33 = vld [vmem:[%s3571_s4 + $0x4] sm:$0x1] }
 0x20e   : > { %v895_v0 = vpop.f32.mrf.mxu2  ;;  %v1096_v24 = vpop.f32.mrf.mxu3 }
 0x20f   : > { %v1097_v29 = vadd.f32 %v3007_v47, %v1096_v24  ;;  %v896_v31 = vadd.f32 %v2990_v26, %v895_v0  ;;  %v2693_v0 = vld [vmem:[%s3571_s4 + $0x5] ss:$0 sm:$0xff] }
 0x210   : > { %1512 = vmatpush.bf16.msra.mxu2 %v3149_v18 }
 0x211   : > { %v1133_v34 = vmax.f32 %v1097_v29, 0.0  ;;  %v930_v41 = vmax.f32 %v896_v31, 0.0  ;;  %v3352_v29 = vld [vmem:[%s3571_s4 + $0x6] ss:$0 sm:$0xff] }
 0x213   : > { %v1198_v32 = vmax.f32 %v3213_v44, %v1133_v34  ;;  %v1158_v44 = vmax.f32 %v3175_v8, %v926_v28 }
 0x214   : > { %1513 = vmatpush.bf16.msra.mxu2 %v3194_v46 }
 0x215   : > { %v1201_v25 = vmax.f32 %v3257_v20, %v1198_v32  ;;  %v3359_v32 = vld [vmem:[%s3570_s3 + $0xf8] sm:$0xff] }
 0x216   : > { %v897_v11 = vpop.f32.mrf.mxu2  ;;  %v1099_v52 = vpop.f32.mrf.mxu3 }
 0x217   : > { %v898_v10 = vadd.f32 %v2990_v26, %v897_v11  ;;  %v1100_v30 = vadd.f32 %v3007_v47, %v1099_v52  ;;  %v1162_v26 = vmax.f32 %v1158_v44, %v930_v41 }
 0x218   : > { %1514 = vmatpush.bf16.msra.mxu2 %v3238_v54 }
 0x219   : > { %v931_v51 = vmax.f32 %v898_v10, 0.0  ;;  %v1134_v49 = vmax.f32 %v1100_v30, 0.0 }
 0x21b   : > { %v1163_v2 = vmax.f32 %v1159_v50, %v931_v51  ;;  %v1199_v8 = vmax.f32 %v1195_v9, %v1134_v49 }
 0x21c   : > { %1515 = vmatpush.bf16.msra.mxu2 %v3264_v19 }
 0x21d   : > { %v1165_v45 = vmax.f32 %v1162_v26, %v1163_v2 }
 0x21e   : > { %v1101_v60 = vpop.f32.mrf.mxu3 }
 0x21f   : > { %v1166_v53 = vmax.f32 %v1164_v36, %v1165_v45  ;;  %v1102_v62 = vadd.f32 %v3007_v47, %v1101_v60 }
 0x220   : > { %1516 = vmatpush.bf16.msra.mxu2 %v3278_v6 }
 0x221   : > { %v1167_v61 = vrot.slane %v1166_v53, 4  ;;  %v1135_v23 = vmax.f32 %v1102_v62, 0.0 }
 0x223   : > { %v1168_v3 = vmax.f32 %v1166_v53, %v1167_v61  ;;  %v1200_v39 = vmax.f32 %v3251_v58, %v1135_v23 }
 0x224   : > { %1517 = vmatpush.bf16.msra.mxu2 %v3286_v27 }
 0x225   : > { %v1169_v42 = vrot.slane %v1168_v3, 2  ;;  %v1202_v7 = vmax.f32 %v1199_v8, %v1200_v39  ;;  %v2703_v8 = vld [vmem:[%s3570_s3 + $0xf0] sm:$0xff] }
 0x227   : > { %v1170_v5 = vmax.f32 %v1168_v3, %v1169_v42  ;;  %v3314_v9 = vmax.f32 %v1201_v25, %v1202_v7 }
 0x228   : > { %1518 = vmatpush.bf16.msra.mxu2 %v3300_v57 }
 0x229   : > { %v1171_v38 = vrot.slane %v1170_v5, 1 }
 0x22b   : > { %v1172_v15 = vmax.f32 %v1170_v5, %v1171_v38 }
 0x22d   : > { %v1264_v47 = vpack.c.bf16 %v1172_v15, %v1172_v15 }
 0x22f   : > { %1321 = vmatmul.bf16.vlgmr.msrb.gmra.mxu0 %v1264_v47 }
 0x230   : > { %1545 = vmatpush.bf16.msrb.mxu0 %v3117_v37 }
 0x234   : > { %1546 = vmatpush.bf16.msrb.mxu0 %v3149_v18 }
 0x238   : > { %1547 = vmatpush.bf16.msrb.mxu0 %v3194_v46 }
 0x23c   : > { %1548 = vmatpush.bf16.msrb.mxu0 %v3238_v54 }
 0x240   : > { %1549 = vmatpush.bf16.msrb.mxu0 %v3264_v19 }
 0x244   : > { %1550 = vmatpush.bf16.msrb.mxu0 %v3278_v6 }
 0x248   : > { %1551 = vmatpush.bf16.msrb.mxu0 %v3286_v27 }
 0x24c   : > { %1552 = vmatpush.bf16.msrb.mxu0 %v3300_v57 }
 0x24e   : > { %v1386_v58 = vpop.f32.mrf.mxu1 }
 0x256   : > { %v1388_v63 = vpop.f32.mrf.mxu1 }
 0x2ac   : > { %v1322_v16 = vpop.f32.mrf.mxu0 }
 0x2ad   : > { %v1323_v48 = vadd.f32 %v1322_v16, %v1261_v33 }
 0x2af   : > { %v3335_v36 = vperm.slane %v1323_v48, 0 }
 0x2b1   : > { %v1387_v20 = vadd.f32 %v1386_v58, %v3335_v36 }
 0x2b3   : > { %v1391_v55 = vadd.f32 %v2693_v0, %v1387_v20 }
 0x2b4   : > { %v1324_v1 = vpop.f32.mrf.mxu0 }
 0x2b5   : > { %v1392_v22 = vmax.f32 %v1391_v55, 0.0 }
 0x2b7   : > { %v1393_v24 = vpack.c.bf16 %v1392_v22, %v1392_v22 }
 0x2b9   : > { %1451 = vmatmul.bf16.vlgmr.msrb.gmra.mxu2 %v1393_v24 }
 0x2ba   : > { %1579 = vmatpush.bf16.msrb.mxu2 %v3117_v37 }
 0x2be   : > { %1580 = vmatpush.bf16.msrb.mxu2 %v3149_v18 }
 0x2c2   : > { %1581 = vmatpush.bf16.msrb.mxu2 %v3194_v46 }
 0x2c6   : > { %1582 = vmatpush.bf16.msrb.mxu2 %v3238_v54 }
 0x2ca   : > { %1583 = vmatpush.bf16.msrb.mxu2 %v3264_v19 }
 0x2ce   : > { %1584 = vmatpush.bf16.msrb.mxu2 %v3278_v6 }
 0x2d2   : > { %1585 = vmatpush.bf16.msrb.mxu2 %v3286_v27 }
 0x2d6   : > { %1586 = vmatpush.bf16.msrb.mxu2 %v3300_v57 }
 0x33c   : > { %v1452_v56 = vpop.f32.mrf.mxu2 }
 0x33d   : > { %v1453_v31 = vadd.f32 %v3352_v29, %v1452_v56 }
 0x33f   : > { %v1456_v34 = vmul.f32 0.125, %v1453_v31 }
 0x341   : > { %v1457_v28 = vsub.f32 %v3241_v59, %v1456_v34  ;;  %v3372_v59 = vld [vmem:[%s3571_s4 + $0x5] sm:$0x1] }
 0x342   : > { %v1472_v40 = vmul.f32 0.875, %v3372_v59  ;;  %v1506_v53 = vmul.f32 0.75, %v3372_v59  ;;  %v1540_v63 = vmul.f32 0.625, %v3372_v59 }
 0x343   : > { %v1458_v43 = vpack.c.bf16 %v1457_v28, %v1457_v28 }
 0x344   : > { %v1454_v11 = vpop.f32.mrf.mxu2  ;;  %v1507_v61 = vperm.slane %v1506_v53, 0  ;;  %v1541_v33 = vperm.slane %v1540_v63, 0 }
 0x345   : > { %1467 = vmatmul.bf16.vlgmr.msrb.gmra.mxu3 %v1458_v43  ;;  %v2655_v43 = vld [vmem:[%s3570_s3 + $0x178] sm:$0xff]  ;;  %v2654_v11 = vld [vmem:[%s3570_s3 + $0x170] sm:$0xff] }
 0x346   : > { %1595 = vmatpush.bf16.msrb.mxu3 %v3359_v32 }
 0x34a   : > { %1596 = vmatpush.bf16.msrb.mxu3 %v2978_v17  ;;  %v1473_v17 = vperm.slane %v1472_v40, 0 }
 0x34e   : > { %1597 = vmatpush.bf16.msrb.mxu3 %v3030_v14 }
 0x352   : > { %1598 = vmatpush.bf16.msrb.mxu3 %v3075_v21 }
 0x356   : > { %1599 = vmatpush.bf16.msrb.mxu3 %v3109_v35 }
 0x35a   : > { %1600 = vmatpush.bf16.msrb.mxu3 %v3134_v4 }
 0x35e   : > { %1601 = vmatpush.bf16.msrb.mxu3 %v3184_v12 }
 0x362   : > { %1602 = vmatpush.bf16.msrb.mxu3 %v3208_v13 }
 0x3c8   : > { %v1468_v41 = vpop.f32.mrf.mxu3 }
 0x3c9   : > { %v1469_v10 = vadd.f32 %v1468_v41, %v3335_v36 }
 0x3cb   : > { %v1474_v25 = vadd.f32 %v1473_v17, %v1469_v10 }
 0x3cd   : > { %v1475_v44 = vmax.f32 %v1474_v25, 0.0 }
 0x3cf   : > { %v1476_v50 = vpack.c.bf16 %v1475_v44, %v1475_v44 }
 0x3d0   : > { %v1470_v51 = vpop.f32.mrf.mxu3 }
 0x3d1   : > { %1485 = vmatmul.bf16.vlgmr.msra.gmra.mxu0 %v1476_v50  ;;  %v2653_v51 = vld [vmem:[%s3570_s3 + $0x168] sm:$0xff] }
 0x3d2   : > { %1613 = vmatpush.bf16.msra.mxu0 %v3117_v37 }
 0x3d6   : > { %1614 = vmatpush.bf16.msra.mxu0 %v3149_v18 }
 0x3da   : > { %1615 = vmatpush.bf16.msra.mxu0 %v3194_v46 }
 0x3de   : > { %1616 = vmatpush.bf16.msra.mxu0 %v3238_v54 }
 0x3e2   : > { %1617 = vmatpush.bf16.msra.mxu0 %v3264_v19 }
 0x3e6   : > { %1618 = vmatpush.bf16.msra.mxu0 %v3278_v6 }
 0x3ea   : > { %1619 = vmatpush.bf16.msra.mxu0 %v3286_v27 }
 0x3ee   : > { %1620 = vmatpush.bf16.msra.mxu0 %v3300_v57 }
 0x44e   : > { %v1486_v52 = vpop.f32.mrf.mxu0 }
 0x44f   : > { %v1487_v30 = vadd.f32 %v3352_v29, %v1486_v52  ;;  %v2652_v52 = vld [vmem:[%s3570_s3 + $0x160] sm:$0xff] }
 0x451   : > { %v1490_v26 = vmul.f32 0.125, %v1487_v30  ;;  %v2651_v30 = vld [vmem:[%s3570_s3 + $0x158] sm:$0xff] }
 0x453   : > { %v1491_v2 = vsub.f32 %v1457_v28, %v1490_v26  ;;  %v2650_v26 = vld [vmem:[%s3570_s3 + $0x150] sm:$0xff] }
 0x455   : > { %v1492_v49 = vpack.c.bf16 %v1491_v2, %v1491_v2 }
 0x456   : > { %v1488_v45 = vpop.f32.mrf.mxu0 }
 0x457   : > { %1501 = vmatmul.bf16.vlgmr.msrb.gmra.mxu1 %v1492_v49  ;;  %v2648_v49 = vld [vmem:[%s3570_s3 + $0x140] sm:$0xff]  ;;  %v1204_v45 = vrot.slane %v3314_v9, 4 }
 0x458   : > { %1629 = vmatpush.bf16.msrb.mxu1 %v3359_v32 }
 0x45c   : > { %1630 = vmatpush.bf16.msrb.mxu1 %v2703_v8 }
 0x460   : > { %1631 = vmatpush.bf16.msrb.mxu1 %v3030_v14 }
 0x464   : > { %1632 = vmatpush.bf16.msrb.mxu1 %v3075_v21 }
 0x468   : > { %1633 = vmatpush.bf16.msrb.mxu1 %v3109_v35 }
 0x46c   : > { %1634 = vmatpush.bf16.msrb.mxu1 %v3134_v4 }
 0x470   : > { %1635 = vmatpush.bf16.msrb.mxu1 %v3184_v12 }
 0x474   : > { %1636 = vmatpush.bf16.msrb.mxu1 %v3208_v13 }
 0x4d4   : > { %v1502_v60 = vpop.f32.mrf.mxu1 }
 0x4d5   : > { %v1503_v62 = vadd.f32 %v1502_v60, %v3335_v36 }
 0x4d7   : > { %v1508_v3 = vadd.f32 %v1507_v61, %v1503_v62  ;;  %v1205_v61 = vmax.f32 %v3314_v9, %v1204_v45 }
 0x4d9   : > { %v1509_v23 = vmax.f32 %v1508_v3, 0.0  ;;  %v1206_v3 = vrot.slane %v1205_v61, 2 }
 0x4db   : > { %v1510_v42 = vpack.c.bf16 %v1509_v23, %v1509_v23 }
 0x4dc   : > { %v1504_v39 = vpop.f32.mrf.mxu1 }
 0x4dd   : > { %1519 = vmatmul.bf16.vlgmr.msra.gmra.mxu2 %v1510_v42  ;;  %v1207_v39 = vmax.f32 %v1205_v61, %v1206_v3 }
 0x4de   : > { %1647 = vmatpush.bf16.msra.mxu2 %v3117_v37 }
 0x4e2   : > { %1648 = vmatpush.bf16.msra.mxu2 %v3149_v18 }
 0x4e6   : > { %1649 = vmatpush.bf16.msra.mxu2 %v3194_v46 }
 0x4ea   : > { %1650 = vmatpush.bf16.msra.mxu2 %v3238_v54 }
 0x4ee   : > { %1651 = vmatpush.bf16.msra.mxu2 %v3264_v19 }
 0x4f2   : > { %1652 = vmatpush.bf16.msra.mxu2 %v3278_v6 }
 0x4f6   : > { %1653 = vmatpush.bf16.msra.mxu2 %v3286_v27 }
 0x4fa   : > { %1654 = vmatpush.bf16.msra.mxu2 %v3300_v57 }
 0x560   : > { %v1520_v5 = vpop.f32.mrf.mxu2 }
 0x561   : > { %v1521_v7 = vadd.f32 %v3352_v29, %v1520_v5  ;;  %v1208_v5 = vrot.slane %v1207_v39, 1 }
 0x563   : > { %v1524_v38 = vmul.f32 0.125, %v1521_v7  ;;  %v1209_v7 = vmax.f32 %v1207_v39, %v1208_v5  ;;  %v2665_v39 = vld [vmem:[%s3570_s3 + $0x1c8] sm:$0xff]  ;;  %v2664_v5 = vld [vmem:[%s3570_s3 + $0x1c0] sm:$0xff] }
 0x565   : > { %v1525_v15 = vsub.f32 %v1491_v2, %v1524_v38  ;;  %v2649_v2 = vld [vmem:[%s3570_s3 + $0x148] sm:$0xff]  ;;  %v1718_v38 = vpack.c.bf16 %v1209_v7, %v1209_v7  ;;  %v2679_v7 = vld [vmem:[%s3570_s3 + $0x238] sm:$0xff] }
 0x567   : > { %v1526_v47 = vpack.c.bf16 %v1525_v15, %v1525_v15 }
 0x568   : > { %v1522_v58 = vpop.f32.mrf.mxu2 }
 0x569   : > { %1535 = vmatmul.bf16.vlgmr.msra.gmra.mxu3 %v1526_v47 }
 0x56a   : > { %1663 = vmatpush.bf16.msra.mxu3 %v3359_v32  ;;  %v1608_v32 = vmul.f32 0.375, %v3372_v59 }
 0x56c   : > { %v1609_v40 = vperm.slane %v1608_v32, 0  ;;  %v2660_v32 = vld [vmem:[%s3570_s3 + $0x1a0] sm:$0xff] }
 0x56e   : > { %1664 = vmatpush.bf16.msra.mxu3 %v2703_v8 }
 0x572   : > { %1665 = vmatpush.bf16.msra.mxu3 %v3030_v14 }
 0x576   : > { %1666 = vmatpush.bf16.msra.mxu3 %v3075_v21 }
 0x57a   : > { %1667 = vmatpush.bf16.msra.mxu3 %v3109_v35 }
 0x57e   : > { %1668 = vmatpush.bf16.msra.mxu3 %v3134_v4 }
 0x582   : > { %1669 = vmatpush.bf16.msra.mxu3 %v3184_v12 }
 0x586   : > { %1670 = vmatpush.bf16.msra.mxu3 %v3208_v13 }
 0x5ec   : > { %v1536_v16 = vpop.f32.mrf.mxu3 }
 0x5ed   : > { %v1537_v48 = vadd.f32 %v1536_v16, %v3335_v36 }
 0x5ef   : > { %v1542_v0 = vadd.f32 %v1541_v33, %v1537_v48 }
 0x5f1   : > { %v1543_v20 = vmax.f32 %v1542_v0, 0.0 }
 0x5f3   : > { %v1544_v55 = vpack.c.bf16 %v1543_v20, %v1543_v20 }
 0x5f4   : > { %v1538_v14 = vpop.f32.mrf.mxu3 }
 0x5f5   : > { %1553 = vmatmul.bf16.vlgmr.msrb.gmra.mxu0 %v1544_v55 }
 0x5f6   : > { %1681 = vmatpush.bf16.msrb.mxu0 %v3117_v37 }
 0x5fa   : > { %1682 = vmatpush.bf16.msrb.mxu0 %v3149_v18  ;;  %v1574_v18 = vmul.f32 0.5, %v3372_v59 }
 0x5fe   : > { %1683 = vmatpush.bf16.msrb.mxu0 %v3194_v46  ;;  %v1575_v46 = vperm.slane %v1574_v18, 0 }
 0x602   : > { %1684 = vmatpush.bf16.msrb.mxu0 %v3238_v54 }
 0x606   : > { %1685 = vmatpush.bf16.msrb.mxu0 %v3264_v19 }
 0x60a   : > { %1686 = vmatpush.bf16.msrb.mxu0 %v3278_v6 }
 0x60e   : > { %1687 = vmatpush.bf16.msrb.mxu0 %v3286_v27 }
 0x612   : > { %1688 = vmatpush.bf16.msrb.mxu0 %v3300_v57 }
 0x672   : > { %v1554_v21 = vpop.f32.mrf.mxu0 }
 0x673   : > { %v1555_v35 = vadd.f32 %v3352_v29, %v1554_v21 }
 0x675   : > { %v1558_v4 = vmul.f32 0.125, %v1555_v35 }
 0x677   : > { %v1559_v12 = vsub.f32 %v1525_v15, %v1558_v4  ;;  %v1642_v15 = vmul.f32 0.25, %v3372_v59 }
 0x679   : > { %v1560_v37 = vpack.c.bf16 %v1559_v12, %v1559_v12  ;;  %v1643_v47 = vperm.slane %v1642_v15, 0  ;;  %v2677_v15 = vld [vmem:[%s3570_s3 + $0x228] sm:$0xff] }
 0x67a   : > { %v1556_v13 = vpop.f32.mrf.mxu0 }
 0x67b   : > { %1569 = vmatmul.bf16.vlgmr.msra.gmra.mxu1 %v1560_v37  ;;  %v1676_v37 = vmul.f32 0.125, %v3372_v59  ;;  %v1696_v59 = vlaneseq }
 0x67c   : > { %1784 = vmatpush.bf16.msra.mxu1 %v2655_v43 }
 0x67d   : > { %v1677_v13 = vperm.slane %v1676_v37, 0 }
 0x680   : > { %1785 = vmatpush.bf16.msra.mxu1 %v2654_v11 }
 0x684   : > { %1786 = vmatpush.bf16.msra.mxu1 %v2653_v51  ;;  %v2669_v51 = vld [vmem:[%s3570_s3 + $0x1e8] sm:$0xff] }
 0x688   : > { %1787 = vmatpush.bf16.msra.mxu1 %v2652_v52 }
 0x68c   : > { %1788 = vmatpush.bf16.msra.mxu1 %v2651_v30  ;;  %v2668_v30 = vld [vmem:[%s3570_s3 + $0x1e0] sm:$0xff] }
 0x690   : > { %1789 = vmatpush.bf16.msra.mxu1 %v2650_v26  ;;  %v2667_v26 = vld [vmem:[%s3570_s3 + $0x1d8] sm:$0xff] }
 0x694   : > { %1790 = vmatpush.bf16.msra.mxu1 %v2649_v2 }
 0x698   : > { %1791 = vmatpush.bf16.msra.mxu1 %v2648_v49 }
 0x6f8   : > { %v1570_v54 = vpop.f32.mrf.mxu1 }
 0x6f9   : > { %v1571_v19 = vadd.f32 %v1570_v54, %v3335_v36 }
 0x6fb   : > { %v1576_v1 = vadd.f32 %v1575_v46, %v1571_v19 }
 0x6fd   : > { %v1577_v6 = vmax.f32 %v1576_v1, 0.0 }
 0x6ff   : > { %v1578_v22 = vpack.c.bf16 %v1577_v6, %v1577_v6 }
 0x700   : > { %v1572_v27 = vpop.f32.mrf.mxu1 }
 0x701   : > { %1587 = vmatmul.bf16.vlgmr.msrb.gmra.mxu2 %v1578_v22  ;;  %v2663_v22 = vld [vmem:[%s3570_s3 + $0x1b8] sm:$0xff]  ;;  %v2662_v27 = vld [vmem:[%s3570_s3 + $0x1b0] sm:$0xff] }
 0x702   : > { %1864 = vmatpush.bf16.msrb.mxu2 %v2663_v22 }
 0x706   : > { %1865 = vmatpush.bf16.msrb.mxu2 %v2662_v27 }
 0x784   : > { %v1588_v57 = vpop.f32.mrf.mxu2 }
 0x785   : > { %v1589_v24 = vadd.f32 %v3352_v29, %v1588_v57  ;;  %v3469_v57 = vand.u32 127, %v1696_v59 }
 0x787   : > { %v1592_v56 = vmul.f32 0.125, %v1589_v24  ;;  %vm1698_vm1 = vcmp.ge.s32.totalorder %v3469_v57, 3  ;;  %vm1699_vm2 = vcmp.lt.s32.totalorder %v3469_v57, 7  ;;  %vm2048_vm7 = vcmp.eq.s32.totalorder %v3469_v57, 7 }
 0x788   : > { %vm3474_vm3 = vmand %vm1698_vm1, %vm1699_vm2 }
 0x789   : > { %v1593_v31 = vsub.f32 %v1559_v12, %v1592_v56 }
 0x78b   : > { %v1594_v34 = vpack.c.bf16 %v1593_v31, %v1593_v31 }
 0x78c   : > { %v1590_v28 = vpop.f32.mrf.mxu2 }
 0x78d   : > { %1603 = vmatmul.bf16.vlgmr.msrb.gmra.mxu3 %v1594_v34 }
 0x810   : > { %v1604_v17 = vpop.f32.mrf.mxu3 }
 0x811   : > { %v1605_v41 = vadd.f32 %v1604_v17, %v3335_v36  ;;  %v2658_v17 = vld [vmem:[%s3570_s3 + $0x190] sm:$0xff] }
 0x813   : > { %v1610_v10 = vadd.f32 %v1609_v40, %v1605_v41  ;;  %v2659_v40 = vld [vmem:[%s3570_s3 + $0x198] sm:$0xff]  ;;  %v2657_v41 = vld [vmem:[%s3570_s3 + $0x188] sm:$0xff] }
 0x815   : > { %v1611_v25 = vmax.f32 %v1610_v10, 0.0  ;;  %v2656_v10 = vld [vmem:[%s3570_s3 + $0x180] sm:$0xff] }
 0x817   : > { %v1612_v44 = vpack.c.bf16 %v1611_v25, %v1611_v25  ;;  %v2671_v25 = vld [vmem:[%s3570_s3 + $0x1f8] sm:$0xff] }
 0x818   : > { %v1606_v50 = vpop.f32.mrf.mxu3  ;;  %1949 = vmatpush.bf16.msrb.mxu3 %v2671_v25 }
 0x819   : > { %1621 = vmatmul.bf16.vlgmr.msra.gmra.mxu0 %v1612_v44  ;;  %v2670_v44 = vld [vmem:[%s3570_s3 + $0x1f0] sm:$0xff] }
 0x81a   : > { %2031 = vmatpush.bf16.msra.mxu0 %v2679_v7 }
 0x81c   : > { %1950 = vmatpush.bf16.msrb.mxu3 %v2670_v44 }
 0x820   : > { %1951 = vmatpush.bf16.msrb.mxu3 %v2669_v51 }
 0x824   : > { %1952 = vmatpush.bf16.msrb.mxu3 %v2668_v30 }
 0x828   : > { %1953 = vmatpush.bf16.msrb.mxu3 %v2667_v26 }
 0x896   : > { %v1622_v8 = vpop.f32.mrf.mxu0 }
 0x897   : > { %v1623_v53 = vadd.f32 %v3352_v29, %v1622_v8  ;;  %v2666_v8 = vld [vmem:[%s3570_s3 + $0x1d0] sm:$0xff] }
 0x898   : > { %1954 = vmatpush.bf16.msrb.mxu3 %v2666_v8 }
 0x899   : > { %v1626_v60 = vmul.f32 0.125, %v1623_v53 }
 0x89b   : > { %v1627_v62 = vsub.f32 %v1593_v31, %v1626_v60 }
 0x89c   : > { %1955 = vmatpush.bf16.msrb.mxu3 %v2665_v39 }
 0x89d   : > { %v1628_v23 = vpack.c.bf16 %v1627_v62, %v1627_v62 }
 0x89e   : > { %v1624_v42 = vpop.f32.mrf.mxu0 }
 0x89f   : > { %1637 = vmatmul.bf16.vlgmr.msrb.gmra.mxu1 %v1628_v23 }
 0x8a0   : > { %1956 = vmatpush.bf16.msrb.mxu3 %v2664_v5 }
 0x8af   : > { %1792 = vmatmul.bf16.vlgmr.msra.gmra.mxu1 %v1718_v38  ;;  %v2678_v38 = vld [vmem:[%s3570_s3 + $0x230] sm:$0xff] }
 0x8b0   : > { %2032 = vmatpush.bf16.msra.mxu0 %v2678_v38 }
 0x8b4   : > { %2033 = vmatpush.bf16.msra.mxu0 %v2677_v15 }
 0x91c   : > { %v1638_v58 = vpop.f32.mrf.mxu1 }
 0x91d   : > { %v1639_v63 = vadd.f32 %v1638_v58, %v3335_v36  ;;  %v2675_v58 = vld [vmem:[%s3570_s3 + $0x218] sm:$0xff] }
 0x91f   : > { %v1644_v33 = vadd.f32 %v1643_v47, %v1639_v63  ;;  %v2676_v47 = vld [vmem:[%s3570_s3 + $0x220] sm:$0xff]  ;;  %v2674_v63 = vld [vmem:[%s3570_s3 + $0x210] sm:$0xff] }
 0x920   : > { %2034 = vmatpush.bf16.msra.mxu0 %v2676_v47 }
 0x921   : > { %v1645_v16 = vmax.f32 %v1644_v33, 0.0 }
 0x923   : > { %v1646_v9 = vpack.c.bf16 %v1645_v16, %v1645_v16  ;;  %v2695_v16 = vld [vmem:[%s3571_s4 + $0x7] ss:$0 sm:$0xff] }
 0x924   : > { %v1640_v48 = vpop.f32.mrf.mxu1  ;;  %2035 = vmatpush.bf16.msra.mxu0 %v2675_v58 }
 0x925   : > { %1655 = vmatmul.bf16.vlgmr.msra.gmra.mxu2 %v1646_v9 }
 0x928   : > { %2036 = vmatpush.bf16.msra.mxu0 %v2674_v63 }
 0x92c   : > { %v3458_v0 = vpop.f32.mrf.mxu1 }
 0x92d   : > { %v1815_v33 = vperm.slane %v3458_v0, 0  ;;  %v2672_v0 = vld [vmem:[%s3570_s3 + $0x200] sm:$0xff] }
 0x934   : > { %v1795_v20 = vpop.f32.mrf.mxu1 }
 0x9a8   : > { %v1656_v55 = vpop.f32.mrf.mxu2 }
 0x9a9   : > { %v1657_v14 = vadd.f32 %v3352_v29, %v1656_v55 }
 0x9ab   : > { %v1660_v21 = vmul.f32 0.125, %v1657_v14 }
 0x9ad   : > { %v1661_v35 = vsub.f32 %v1627_v62, %v1660_v21 }
 0x9af   : > { %v1662_v4 = vpack.c.bf16 %v1661_v35, %v1661_v35 }
 0x9b0   : > { %v1658_v12 = vpop.f32.mrf.mxu2 }
 0x9b1   : > { %1671 = vmatmul.bf16.vlgmr.msra.gmra.mxu3 %v1662_v4  ;;  %v2696_v4 = vld [vmem:[%s3571_s4 + $0x8] ss:$0 sm:$0xff] }
 0xa34   : > { %v1672_v18 = vpop.f32.mrf.mxu3 }
 0xa35   : > { %v1673_v46 = vadd.f32 %v1672_v18, %v3335_v36 }
 0xa37   : > { %v1678_v54 = vadd.f32 %v1677_v13, %v1673_v46 }
 0xa39   : > { %v1679_v19 = vmax.f32 %v1678_v54, 0.0  ;;  %v2697_v54 = vld [vmem:[%s3571_s4 + $0x9] ss:$0 sm:$0xff] }
 0xa3b   : > { %v1680_v1 = vpack.c.bf16 %v1679_v19, %v1679_v19 }
 0xa3c   : > { %v1674_v6 = vpop.f32.mrf.mxu3 }
 0xa3d   : > { %1689 = vmatmul.bf16.vlgmr.msrb.gmra.mxu0 %v1680_v1 }
 0xaba   : > { %v1690_v24 = vpop.f32.mrf.mxu0 }
 0xabb   : > { %v1691_v36 = vadd.f32 %v3352_v29, %v1690_v24  ;;  %v2661_v29 = vld [vmem:[%s3570_s3 + $0x1a8] sm:$0xff] }
 0xabc   : > { %1866 = vmatpush.bf16.msrb.mxu2 %v2661_v29 }
 0xabd   : > { %v1694_v56 = vmul.f32 0.125, %v1691_v36 }
 0xabf   : > { %v1695_v31 = vsub.f32 %v1661_v35, %v1694_v56  ;;  %v2673_v35 = vld [vmem:[%s3570_s3 + $0x208] sm:$0xff] }
 0xac0   : > { %1867 = vmatpush.bf16.msrb.mxu2 %v2660_v32  ;;  %2037 = vmatpush.bf16.msra.mxu0 %v2673_v35 }
 0xac1   : > { %v1701_v28 = vmul.f32 %v1695_v31, %v1695_v31 }
 0xac2   : > { %v1692_v43 = vpop.f32.mrf.mxu0 }
 0xac3   : > { %v1702_v11 = vsel %vm3474_vm3, %v1701_v28, 0.0 }
 0xac4   : > { %1703 = vadd.xlane.f32.xlu0 %v1702_v11  ;;  %1868 = vmatpush.bf16.msrb.mxu2 %v2659_v40 }
 0xac5   : > { %2038 = vmatpush.bf16.msra.mxu0 %v2672_v0 }
 0xac8   : > { %1869 = vmatpush.bf16.msrb.mxu2 %v2658_v17 }
 0xacc   : > { %1870 = vmatpush.bf16.msrb.mxu2 %v2657_v41 }
 0xad0   : > { %1871 = vmatpush.bf16.msrb.mxu2 %v2656_v10 }
 0xb37   : > { %v1704_v50 = vpop.xlane.xlu0 %1703 }
 0xb38   : > { %v1705_v52 = vadd.f32 1e-08, %v1704_v50 }
 0xb3a   : > { %2698 = vrsqrt.f32 %v1705_v52  ;;  %vm1712_vm5 = vweird.f32 %v1705_v52 }
 0xb40   : > { %v2699_v2 = vpop.eup %2698 }
 0xb41   : > { %v1707_v49 = vmul.f32 %v2699_v2, %v1705_v52  ;;  %vm1713_vm4 = vweird.f32 %v2699_v2 }
 0xb42   : > { %vm1714_vm6 = vmor %vm1712_vm5, %vm1713_vm4 }
 0xb43   : > { %v1708_v45 = vmul.f32 %v2699_v2, %v1707_v49 }
 0xb45   : > { %v1709_v53 = vmul.f32 0.5, %v1708_v45 }
 0xb47   : > { %v1710_v61 = vsub.f32 1.5, %v1709_v53 }
 0xb49   : > { %v1711_v60 = vmul.f32 %v2699_v2, %v1710_v61 }
 0xb4b   : > { %v1715_v62 = vsel %vm1714_vm6, %v2699_v2, %v1711_v60 }
 0xb4c   : > { %v1716_v3 = vsel %vm3474_vm3, %v1715_v62, 1.0 }
 0xb4d   : > { %v1717_v23 = vmul.f32 %v1716_v3, %v1695_v31 }
 0xb4f   : > { %v1797_v42 = vpack.c.bf16 %v1717_v23, %v1717_v23 }
 0xb51   : > { %1872 = vmatmul.bf16.vlgmr.msrb.gmra.mxu2 %v1797_v42 }
 0xbd4   : > { %v1873_v9 = vpop.f32.mrf.mxu2 }
 0xbd5   : > { %v1874_v48 = vadd.f32 %v1873_v9, %v1815_v33 }
 0xbd7   : > { %v1879_v20 = vadd.f32 %v2695_v16, %v1874_v48 }
 0xbd9   : > { %v1880_v55 = vmax.f32 %v1879_v20, 0.0 }
 0xbdb   : > { %v1881_v14 = vpack.c.bf16 %v1880_v55, %v1880_v55 }
 0xbdc   : > { %v1875_v21 = vpop.f32.mrf.mxu2 }
 0xbdd   : > { %1957 = vmatmul.bf16.vlgmr.msrb.gmra.mxu3 %v1881_v14 }
 0xc60   : > { %v1958_v12 = vpop.f32.mrf.mxu3 }
 0xc61   : > { %v1959_v37 = vadd.f32 %v2696_v4, %v1958_v12 }
 0xc63   : > { %v1962_v13 = vmax.f32 %v1959_v37, 0.0 }
 0xc65   : > { %v1963_v18 = vpack.c.bf16 %v1962_v13, %v1962_v13 }
 0xc67   : > { %2039 = vmatmul.bf16.vlgmr.msra.gmra.mxu0 %v1963_v18 }
 0xc68   : > { %v1960_v46 = vpop.f32.mrf.mxu3 }
 0xce4   : > { %v2040_v19 = vpop.f32.mrf.mxu0 }
 0xce5   : > { %v2041_v1 = vadd.f32 %v2697_v54, %v2040_v19 }
 0xce7   : > { %v2044_v6 = vmul.f32 0.5, %v2041_v1 }
 0xce9   : > { %2700 = vtanh.f32 %v2044_v6 }
 0xcec   : > { %v2042_v22 = vpop.f32.mrf.mxu0 }
 0xcef   : > { %v2701_v27 = vpop.eup %2700 }
 0xcf0   : > { %v2046_v59 = vadd.f32 1.0, %v2701_v27 }
 0xcf2   : > { %v2047_v24 = vmul.f32 0.5, %v2046_v59 }
 0xcf4   : > { %v2049_v36 = vsel %vm2048_vm7, %v2047_v24, %v1717_v23 }
 0xcf5   : > { %2050 = vst [vmem:[%s239_s24] sm:$0xff] %v2049_v36 }
 0xcf6 PF: > { %s15_s18 = sadd.s32 1, %s2710_s18  }
 0xcf7   : > { %p12_p4 = scmp.ge.s32.totalorder %s15_s18, 4  }
 0xcf9   :  { %14 = sbr.rel (!%p12_p4) target bundleno = 1 (0x1), region = 81 }

</bundles_post_ra>
